<compile_context>
chip_gen: v5e
topology: v5e:2x2
jax: 0.10.0
libtpu: 0.0.40
codegen_flags: <defaults>
</compile_context>

<pallas_src>
import functools

import jax
import jax.numpy as jnp
import numpy as np
from jax import lax
from jax.experimental import pallas as pl
from jax.experimental.pallas import tpu as pltpu


def _lstm_model_kernel(x_ref, w_in_ref, b_in_ref,
                       w_ih_ref, w_hh_ref, b_gates_ref,
                       w_out_ref, b_out_ref,
                       y_ref, h_ref, c_ref,
                       seq_ref,
                       *, num_layers, hidden, seq_len, batch):
    """Whole forward pass in one kernel invocation (all operands resident in VMEM).

    x_ref       : (T*B, Dp)     bf16   -- flattened (time-major) inputs, lane-padded D
    w_in_ref    : (Dp, H)       bf16   -- input Linear weight (padded rows are 0)
    b_in_ref    : (1, H)        f32
    w_ih_ref    : (L, H, 4H)    bf16   -- "g" gate columns pre-scaled by 2
    w_hh_ref    : (L, H, 4H)    bf16   -- "g" gate columns pre-scaled by 2
    b_gates_ref : (L, 1, 4H)    f32    -- b_ih + b_hh, "g" block pre-scaled by 2
    w_out_ref   : (H, Dp)       bf16   -- padded columns are 0
    b_out_ref   : (1, Dp)       f32    -- padded lanes are 0
    y_ref       : (T*B, Dp)     f32    -- lane-dense output slab
    h_ref/c_ref : (L, B, H)     f32    -- final hidden / cell state per layer
    seq_ref     : (T*B, H)      bf16   -- last layer's hidden sequence (out-GEMM operand)
    """
    H = hidden
    B = batch
    T = seq_len
    L = num_layers
    f32 = jnp.float32
    bf16 = jnp.bfloat16

    # --- phase 1: input Linear + hoisted layer-0 ih projection (slab GEMMs) -----------
    seq0 = (jnp.dot(x_ref[...], w_in_ref[...], preferred_element_type=f32)
            + b_in_ref[...]).astype(bf16)                       # (T*B, H)
    gx0 = (jnp.dot(seq0, w_ih_ref[0], preferred_element_type=f32)
           + b_gates_ref[0])                                    # (T*B, 4H) f32

    # Load per-layer weights once (tiny; L * (H,4H) bf16).
    w_hh = [w_hh_ref[l] for l in range(L)]
    w_ih = [w_ih_ref[l] for l in range(L)]
    b_g = [b_gates_ref[l] for l in range(L)]

    def cell(gates, c_prev):
        # Gate pre-activations already carry the *2 pre-scale on the "g" block, so a
        # single sigmoid pass covers all four gates; tanh(x) = 2*sigmoid(2x) - 1.
        a = jax.nn.sigmoid(gates)                               # one EUP pass, (B, 4H)
        i = a[:, 0 * H:1 * H]
        f = a[:, 1 * H:2 * H]
        g = 2.0 * a[:, 2 * H:3 * H] - 1.0                       # VALU fix-up == tanh
        o = a[:, 3 * H:4 * H]
        c_new = f * c_prev + i * g
        h_new = o * jnp.tanh(c_new)                             # second (narrow) EUP pass
        return h_new, c_new

    # --- phase 2: stacked LSTM layers as a (layer, time) wavefront --------------------
    # Wave s runs layer l's step t = s - l; layer l at step t consumes h_{l-1}[t], which
    # layer l-1 produced one wave earlier, so the critical path is T + L - 1 steps.
    h_bf = [jnp.zeros((B, H), bf16) for _ in range(L)]          # h_l[t-1], bf16 carry
    c = [jnp.zeros((B, H), f32) for _ in range(L)]              # c_l[t-1], f32 carry

    for s in range(T + L - 1):
        h_prev_wave = list(h_bf)                                # snapshot: end of wave s-1
        for l in range(L):
            t = s - l
            if not (0 <= t < T):
                continue
            if l == 0:
                gates = (jnp.dot(h_bf[0], w_hh[0], preferred_element_type=f32)
                         + gx0[t * B:(t + 1) * B, :])
            else:
                x_in = h_prev_wave[l - 1]                       # h_{l-1}[t] (bf16)
                gates = (jnp.dot(h_bf[l], w_hh[l], preferred_element_type=f32)
                         + jnp.dot(x_in, w_ih[l], preferred_element_type=f32)
                         + b_g[l])
            h_new, c_new = cell(gates, c[l])                    # f32
            h_bf[l] = h_new.astype(bf16)                        # single cast per step
            c[l] = c_new
            if l == L - 1:
                seq_ref[t * B:(t + 1) * B, :] = h_bf[l]         # off the critical chain
            if t == T - 1:
                h_ref[l] = h_new
                c_ref[l] = c_new

    # --- phase 3: output Linear as one lane-dense slab GEMM ---------------------------
    y_ref[...] = (jnp.dot(seq_ref[...], w_out_ref[...], preferred_element_type=f32)
                  + b_out_ref[...])


def _pack_params(params, *, d_one_hot, d_pad, hidden, num_layers):
    """Build padded bf16 kernel operands from PyTorch-shaped (pre-transposed) params."""
    H, D = hidden, d_one_hot
    G = 4 * H
    f32, bf16 = jnp.float32, jnp.bfloat16

    # Pre-scale the "g" gate block by 2 so the kernel can use a single sigmoid pass
    # (tanh(x) = 2*sigmoid(2x) - 1).  PyTorch gate order: i, f, g, o.
    gate_scale = jnp.ones((G,), f32).at[2 * H:3 * H].set(2.0)

    w_in = jnp.zeros((d_pad, H), f32).at[:D, :].set(params["w_in_t"]).astype(bf16)
    b_in = params["b_in"].astype(f32)
    w_ih = (params["w_ih_t"] * gate_scale).astype(bf16)
    w_hh = (params["w_hh_t"] * gate_scale).astype(bf16)
    b_gates = (params["b_gates"] * gate_scale).astype(f32)
    w_out = jnp.zeros((H, d_pad), f32).at[:, :D].set(params["w_out_t"]).astype(bf16)
    b_out = jnp.zeros((1, d_pad), f32).at[:, :D].set(params["b_out"])
    return dict(w_in=w_in, b_in=b_in, w_ih=w_ih, w_hh=w_hh, b_gates=b_gates,
                w_out=w_out, b_out=b_out)


def lstm_model_forward(x, params, *, num_layers, hidden):
    """x: (T, B, d_one_hot) float32. Returns (y, (h, c)) like the PyTorch module."""
    T, B, D = x.shape
    H = hidden
    B_pad = ((B + 7) // 8) * 8                     # sublane multiple
    D_pad = ((D + 127) // 128) * 128               # lane-dense input/output Linear

    packed = _pack_params(params, d_one_hot=D, d_pad=D_pad,
                          hidden=H, num_layers=num_layers)
    x_p = jnp.pad(x, ((0, 0), (0, B_pad - B), (0, D_pad - D)))
    x2d = x_p.reshape(T * B_pad, D_pad).astype(jnp.bfloat16)

    vmem = pl.BlockSpec(memory_space=pltpu.MemorySpace.VMEM)
    out_shapes = (
        jax.ShapeDtypeStruct((T * B_pad, D_pad), jnp.float32),        # y (flat, lane-dense)
        jax.ShapeDtypeStruct((num_layers, B_pad, H), jnp.float32),    # h
        jax.ShapeDtypeStruct((num_layers, B_pad, H), jnp.float32),    # c
    )

    kernel = functools.partial(_lstm_model_kernel,
                               num_layers=num_layers, hidden=H,
                               seq_len=T, batch=B_pad)

    y2d, h_pad, c_pad = pl.pallas_call(
        kernel,
        out_shape=out_shapes,
        in_specs=[vmem] * 8,
        out_specs=(vmem, vmem, vmem),
        scratch_shapes=[pltpu.VMEM((T * B_pad, H), jnp.bfloat16)],    # last layer's seq
    )(x2d,
      packed["w_in"], packed["b_in"],
      packed["w_ih"], packed["w_hh"], packed["b_gates"],
      packed["w_out"], packed["b_out"])

    y = y2d.reshape(T, B_pad, D_pad)[:, :B, :D]
    h = h_pad[:, :B, :]
    c = c_pad[:, :B, :]
    return y, (h, c)


def init_params(key, d_one_hot, d_lstm, num_layers):
    """Deterministic synthetic parameters (PyTorch-like uniform init), f32, pre-transposed."""
    ks = jax.random.split(key, 8)
    H = d_lstm
    k_lin = 1.0 / np.sqrt(d_one_hot)
    k_lstm = 1.0 / np.sqrt(H)
    k_out = 1.0 / np.sqrt(H)
    u = lambda k, shape, s: jax.random.uniform(k, shape, jnp.float32, -s, s)

    w_in_t = u(ks[0], (d_one_hot, H), k_lin)              # Linear weight, pre-transposed
    b_in = u(ks[1], (1, H), k_lin)

    w_ih_t = u(ks[2], (num_layers, H, 4 * H), k_lstm)     # (H, 4H) per layer
    w_hh_t = u(ks[3], (num_layers, H, 4 * H), k_lstm)
    b_ih = u(ks[4], (num_layers, 1, 4 * H), k_lstm)
    b_hh = u(ks[5], (num_layers, 1, 4 * H), k_lstm)
    b_gates = b_ih + b_hh

    w_out_t = u(ks[6], (H, d_one_hot), k_out)
    b_out = u(ks[7], (1, d_one_hot), k_out)

    return dict(w_in_t=w_in_t, b_in=b_in,
                w_ih_t=w_ih_t, w_hh_t=w_hh_t, b_gates=b_gates,
                w_out_t=w_out_t, b_out=b_out)


def reference_forward(x, params, *, num_layers, hidden):
    """Pure-JAX f32 reference of the same forward pass, for a sanity check."""
    H = hidden
    prec = lax.Precision.HIGHEST
    seq = jnp.einsum("tbd,dh->tbh", x, params["w_in_t"], precision=prec) + params["b_in"]
    hs, cs = [], []
    for l in range(num_layers):
        w_ih = params["w_ih_t"][l]
        w_hh = params["w_hh_t"][l]
        b_g = params["b_gates"][l]
        h = jnp.zeros((x.shape[1], H), jnp.float32)
        c = jnp.zeros((x.shape[1], H), jnp.float32)
        outs = []
        for t in range(x.shape[0]):
            gates = (jnp.dot(seq[t], w_ih, precision=prec)
                     + jnp.dot(h, w_hh, precision=prec) + b_g)
            i = jax.nn.sigmoid(gates[:, 0 * H:1 * H])
            f = jax.nn.sigmoid(gates[:, 1 * H:2 * H])
            g = jnp.tanh(gates[:, 2 * H:3 * H])
            o = jax.nn.sigmoid(gates[:, 3 * H:4 * H])
            c = f * c + i * g
            h = o * jnp.tanh(c)
            outs.append(h)
        seq = jnp.stack(outs, axis=0)
        hs.append(h)
        cs.append(c)
    y = jnp.einsum("tbh,hd->tbd", seq, params["w_out_t"], precision=prec) + params["b_out"]
    return y, (jnp.stack(hs, 0), jnp.stack(cs, 0))


if __name__ == "__main__":
    T, B = 8, 2                 # seq length, batch
    d_one_hot = 16
    d_lstm = 32
    num_lstm_layers = 2

    key = jax.random.PRNGKey(0)
    kx, kp = jax.random.split(key)
    x = jax.random.normal(kx, (T, B, d_one_hot), dtype=jnp.float32)
    params = init_params(kp, d_one_hot, d_lstm, num_lstm_layers)

    y, (h, c) = lstm_model_forward(x, params, num_layers=num_lstm_layers, hidden=d_lstm)
    jax.block_until_ready((y, h, c))

    y_ref, (h_ref, c_ref) = reference_forward(x, params,
                                              num_layers=num_lstm_layers, hidden=d_lstm)
    assert y.shape == (T, B, d_one_hot)
    assert h.shape == (num_lstm_layers, B, d_lstm)
    assert c.shape == (num_lstm_layers, B, d_lstm)
    # bf16 MXU operands => slightly looser tolerance than the f32 reference.
    np.testing.assert_allclose(np.asarray(y), np.asarray(y_ref), rtol=3e-2, atol=3e-2)
    np.testing.assert_allclose(np.asarray(h), np.asarray(h_ref), rtol=3e-2, atol=3e-2)
    np.testing.assert_allclose(np.asarray(c), np.asarray(c_ref), rtol=3e-2, atol=3e-2)

    print("KERNEL_OK")
</pallas_src>

<mosaic_0001>
module attributes {stable_mosaic.version = 11 : i64} {
  func.func @_lstm_model_kernel(%arg0: memref<64x128xbf16, #tpu.memory_space<vmem>>, %arg1: memref<128x32xbf16, #tpu.memory_space<vmem>>, %arg2: memref<1x32xf32, #tpu.memory_space<vmem>>, %arg3: memref<2x32x128xbf16, #tpu.memory_space<vmem>>, %arg4: memref<2x32x128xbf16, #tpu.memory_space<vmem>>, %arg5: memref<2x1x128xf32, #tpu.memory_space<vmem>>, %arg6: memref<32x128xbf16, #tpu.memory_space<vmem>>, %arg7: memref<1x128xf32, #tpu.memory_space<vmem>>, %arg8: memref<64x128xf32, #tpu.memory_space<vmem>>, %arg9: memref<2x8x32xf32, #tpu.memory_space<vmem>>, %arg10: memref<2x8x32xf32, #tpu.memory_space<vmem>>, %arg11: memref<64x32xbf16, #tpu.memory_space<vmem>>) attributes {dimension_semantics = [], scalar_prefetch = 0 : i64, scratch_operands = 1 : i64, tpu.core_type = #tpu.core_type<tc>} {
    %c0 = arith.constant 0 : index
    %c0_0 = arith.constant 0 : index
    %0 = vector.load %arg0[%c0, %c0_0] : memref<64x128xbf16, #tpu.memory_space<vmem>>, vector<64x128xbf16>
    %c0_1 = arith.constant 0 : index
    %c0_2 = arith.constant 0 : index
    %1 = vector.load %arg1[%c0_1, %c0_2] : memref<128x32xbf16, #tpu.memory_space<vmem>>, vector<128x32xbf16>
    %cst = arith.constant dense<0.000000e+00> : vector<64x32xf32>
    %2 = tpu.matmul %0, %1, %cst {dimension_numbers = #tpu.dot_dimension_numbers<[1], [0], [0], [1], [0, 0, 1, 1], [], []>} : vector<64x128xbf16>, vector<128x32xbf16>, vector<64x32xf32> -> vector<64x32xf32>
    %c0_3 = arith.constant 0 : index
    %c0_4 = arith.constant 0 : index
    %3 = vector.load %arg2[%c0_3, %c0_4] : memref<1x32xf32, #tpu.memory_space<vmem>>, vector<1x32xf32>
    %4 = vector.broadcast %3 : vector<1x32xf32> to vector<64x32xf32>
    %5 = arith.addf %2, %4 : vector<64x32xf32>
    %6 = arith.truncf %5 : vector<64x32xf32> to vector<64x32xbf16>
    %c0_5 = arith.constant 0 : index
    %c0_6 = arith.constant 0 : index
    %c0_7 = arith.constant 0 : index
    %7 = vector.load %arg3[%c0_5, %c0_6, %c0_7] : memref<2x32x128xbf16, #tpu.memory_space<vmem>>, vector<1x32x128xbf16>
    %8 = vector.shape_cast %7 : vector<1x32x128xbf16> to vector<32x128xbf16>
    %cst_8 = arith.constant dense<0.000000e+00> : vector<64x128xf32>
    %9 = tpu.matmul %6, %8, %cst_8 {dimension_numbers = #tpu.dot_dimension_numbers<[1], [0], [0], [1], [0, 0, 1, 1], [], []>} : vector<64x32xbf16>, vector<32x128xbf16>, vector<64x128xf32> -> vector<64x128xf32>
    %c0_9 = arith.constant 0 : index
    %c0_10 = arith.constant 0 : index
    %c0_11 = arith.constant 0 : index
    %10 = vector.load %arg5[%c0_9, %c0_10, %c0_11] : memref<2x1x128xf32, #tpu.memory_space<vmem>>, vector<1x1x128xf32>
    %11 = vector.shape_cast %10 : vector<1x1x128xf32> to vector<1x128xf32>
    %12 = vector.broadcast %11 : vector<1x128xf32> to vector<64x128xf32>
    %13 = arith.addf %9, %12 : vector<64x128xf32>
    %c0_12 = arith.constant 0 : index
    %c0_13 = arith.constant 0 : index
    %c0_14 = arith.constant 0 : index
    %14 = vector.load %arg4[%c0_12, %c0_13, %c0_14] : memref<2x32x128xbf16, #tpu.memory_space<vmem>>, vector<1x32x128xbf16>
    %15 = vector.shape_cast %14 : vector<1x32x128xbf16> to vector<32x128xbf16>
    %c1 = arith.constant 1 : index
    %c0_15 = arith.constant 0 : index
    %c0_16 = arith.constant 0 : index
    %16 = vector.load %arg4[%c1, %c0_15, %c0_16] : memref<2x32x128xbf16, #tpu.memory_space<vmem>>, vector<1x32x128xbf16>
    %17 = vector.shape_cast %16 : vector<1x32x128xbf16> to vector<32x128xbf16>
    %c1_17 = arith.constant 1 : index
    %c0_18 = arith.constant 0 : index
    %c0_19 = arith.constant 0 : index
    %18 = vector.load %arg3[%c1_17, %c0_18, %c0_19] : memref<2x32x128xbf16, #tpu.memory_space<vmem>>, vector<1x32x128xbf16>
    %19 = vector.shape_cast %18 : vector<1x32x128xbf16> to vector<32x128xbf16>
    %c1_20 = arith.constant 1 : index
    %c0_21 = arith.constant 0 : index
    %c0_22 = arith.constant 0 : index
    %20 = vector.load %arg5[%c1_20, %c0_21, %c0_22] : memref<2x1x128xf32, #tpu.memory_space<vmem>>, vector<1x1x128xf32>
    %21 = vector.shape_cast %20 : vector<1x1x128xf32> to vector<1x128xf32>
    %cst_23 = arith.constant 0.000000e+00 : bf16
    %22 = vector.broadcast %cst_23 : bf16 to vector<8x32xbf16>
    %cst_24 = arith.constant 0.000000e+00 : bf16
    %23 = vector.broadcast %cst_24 : bf16 to vector<8x32xbf16>
    %cst_25 = arith.constant 0.000000e+00 : f32
    %24 = vector.broadcast %cst_25 : f32 to vector<8x32xf32>
    %cst_26 = arith.constant 0.000000e+00 : f32
    %25 = vector.broadcast %cst_26 : f32 to vector<8x32xf32>
    %cst_27 = arith.constant dense<0.000000e+00> : vector<8x128xf32>
    %26 = tpu.matmul %22, %15, %cst_27 {dimension_numbers = #tpu.dot_dimension_numbers<[1], [0], [0], [1], [0, 0, 1, 1], [], []>} : vector<8x32xbf16>, vector<32x128xbf16>, vector<8x128xf32> -> vector<8x128xf32>
    %27 = vector.extract_strided_slice %13 {offsets = [0, 0], sizes = [8, 128], strides = [1, 1]} : vector<64x128xf32> to vector<8x128xf32>
    %28 = arith.addf %26, %27 : vector<8x128xf32>
    %29 = arith.negf %28 : vector<8x128xf32>
    %30 = math.exp %29 : vector<8x128xf32>
    %cst_28 = arith.constant 1.000000e+00 : f32
    %31 = vector.broadcast %cst_28 : f32 to vector<8x128xf32>
    %32 = arith.addf %31, %30 : vector<8x128xf32>
    %33 = arith.divf %31, %32 : vector<8x128xf32>
    %34 = vector.extract_strided_slice %33 {offsets = [0, 0], sizes = [8, 32], strides = [1, 1]} : vector<8x128xf32> to vector<8x32xf32>
    %35 = vector.extract_strided_slice %33 {offsets = [0, 32], sizes = [8, 32], strides = [1, 1]} : vector<8x128xf32> to vector<8x32xf32>
    %36 = vector.extract_strided_slice %33 {offsets = [0, 64], sizes = [8, 32], strides = [1, 1]} : vector<8x128xf32> to vector<8x32xf32>
    %cst_29 = arith.constant 2.000000e+00 : f32
    %37 = vector.broadcast %cst_29 : f32 to vector<8x32xf32>
    %38 = arith.mulf %37, %36 : vector<8x32xf32>
    %cst_30 = arith.constant 1.000000e+00 : f32
    %39 = vector.broadcast %cst_30 : f32 to vector<8x32xf32>
    %40 = arith.subf %38, %39 : vector<8x32xf32>
    %41 = vector.extract_strided_slice %33 {offsets = [0, 96], sizes = [8, 32], strides = [1, 1]} : vector<8x128xf32> to vector<8x32xf32>
    %42 = arith.mulf %35, %24 : vector<8x32xf32>
    %43 = arith.mulf %34, %40 : vector<8x32xf32>
    %44 = arith.addf %42, %43 : vector<8x32xf32>
    %45 = math.tanh %44 : vector<8x32xf32>
    %46 = arith.mulf %41, %45 : vector<8x32xf32>
    %47 = arith.truncf %46 : vector<8x32xf32> to vector<8x32xbf16>
    %cst_31 = arith.constant dense<0.000000e+00> : vector<8x128xf32>
    %48 = tpu.matmul %47, %15, %cst_31 {dimension_numbers = #tpu.dot_dimension_numbers<[1], [0], [0], [1], [0, 0, 1, 1], [], []>} : vector<8x32xbf16>, vector<32x128xbf16>, vector<8x128xf32> -> vector<8x128xf32>
    %49 = vector.extract_strided_slice %13 {offsets = [8, 0], sizes = [8, 128], strides = [1, 1]} : vector<64x128xf32> to vector<8x128xf32>
    %50 = arith.addf %48, %49 : vector<8x128xf32>
    %51 = arith.negf %50 : vector<8x128xf32>
    %52 = math.exp %51 : vector<8x128xf32>
    %cst_32 = arith.constant 1.000000e+00 : f32
    %53 = vector.broadcast %cst_32 : f32 to vector<8x128xf32>
    %54 = arith.addf %53, %52 : vector<8x128xf32>
    %55 = arith.divf %53, %54 : vector<8x128xf32>
    %56 = vector.extract_strided_slice %55 {offsets = [0, 0], sizes = [8, 32], strides = [1, 1]} : vector<8x128xf32> to vector<8x32xf32>
    %57 = vector.extract_strided_slice %55 {offsets = [0, 32], sizes = [8, 32], strides = [1, 1]} : vector<8x128xf32> to vector<8x32xf32>
    %58 = vector.extract_strided_slice %55 {offsets = [0, 64], sizes = [8, 32], strides = [1, 1]} : vector<8x128xf32> to vector<8x32xf32>
    %cst_33 = arith.constant 2.000000e+00 : f32
    %59 = vector.broadcast %cst_33 : f32 to vector<8x32xf32>
    %60 = arith.mulf %59, %58 : vector<8x32xf32>
    %cst_34 = arith.constant 1.000000e+00 : f32
    %61 = vector.broadcast %cst_34 : f32 to vector<8x32xf32>
    %62 = arith.subf %60, %61 : vector<8x32xf32>
    %63 = vector.extract_strided_slice %55 {offsets = [0, 96], sizes = [8, 32], strides = [1, 1]} : vector<8x128xf32> to vector<8x32xf32>
    %64 = arith.mulf %57, %44 : vector<8x32xf32>
    %65 = arith.mulf %56, %62 : vector<8x32xf32>
    %66 = arith.addf %64, %65 : vector<8x32xf32>
    %67 = math.tanh %66 : vector<8x32xf32>
    %68 = arith.mulf %63, %67 : vector<8x32xf32>
    %69 = arith.truncf %68 : vector<8x32xf32> to vector<8x32xbf16>
    %cst_35 = arith.constant dense<0.000000e+00> : vector<8x128xf32>
    %70 = tpu.matmul %23, %17, %cst_35 {dimension_numbers = #tpu.dot_dimension_numbers<[1], [0], [0], [1], [0, 0, 1, 1], [], []>} : vector<8x32xbf16>, vector<32x128xbf16>, vector<8x128xf32> -> vector<8x128xf32>
    %cst_36 = arith.constant dense<0.000000e+00> : vector<8x128xf32>
    %71 = tpu.matmul %47, %19, %cst_36 {dimension_numbers = #tpu.dot_dimension_numbers<[1], [0], [0], [1], [0, 0, 1, 1], [], []>} : vector<8x32xbf16>, vector<32x128xbf16>, vector<8x128xf32> -> vector<8x128xf32>
    %72 = arith.addf %70, %71 : vector<8x128xf32>
    %73 = vector.broadcast %21 : vector<1x128xf32> to vector<8x128xf32>
    %74 = arith.addf %72, %73 : vector<8x128xf32>
    %75 = arith.negf %74 : vector<8x128xf32>
    %76 = math.exp %75 : vector<8x128xf32>
    %cst_37 = arith.constant 1.000000e+00 : f32
    %77 = vector.broadcast %cst_37 : f32 to vector<8x128xf32>
    %78 = arith.addf %77, %76 : vector<8x128xf32>
    %79 = arith.divf %77, %78 : vector<8x128xf32>
    %80 = vector.extract_strided_slice %79 {offsets = [0, 0], sizes = [8, 32], strides = [1, 1]} : vector<8x128xf32> to vector<8x32xf32>
    %81 = vector.extract_strided_slice %79 {offsets = [0, 32], sizes = [8, 32], strides = [1, 1]} : vector<8x128xf32> to vector<8x32xf32>
    %82 = vector.extract_strided_slice %79 {offsets = [0, 64], sizes = [8, 32], strides = [1, 1]} : vector<8x128xf32> to vector<8x32xf32>
    %cst_38 = arith.constant 2.000000e+00 : f32
    %83 = vector.broadcast %cst_38 : f32 to vector<8x32xf32>
    %84 = arith.mulf %83, %82 : vector<8x32xf32>
    %cst_39 = arith.constant 1.000000e+00 : f32
    %85 = vector.broadcast %cst_39 : f32 to vector<8x32xf32>
    %86 = arith.subf %84, %85 : vector<8x32xf32>
    %87 = vector.extract_strided_slice %79 {offsets = [0, 96], sizes = [8, 32], strides = [1, 1]} : vector<8x128xf32> to vector<8x32xf32>
    %88 = arith.mulf %81, %25 : vector<8x32xf32>
    %89 = arith.mulf %80, %86 : vector<8x32xf32>
    %90 = arith.addf %88, %89 : vector<8x32xf32>
    %91 = math.tanh %90 : vector<8x32xf32>
    %92 = arith.mulf %87, %91 : vector<8x32xf32>
    %93 = arith.truncf %92 : vector<8x32xf32> to vector<8x32xbf16>
    %c0_40 = arith.constant 0 : index
    %c0_41 = arith.constant 0 : index
    %94 = vector.load %arg11[%c0_40, %c0_41] : memref<64x32xbf16, #tpu.memory_space<vmem>>, vector<8x32xbf16>
    tpu.vector_store %arg11[%c0_40, %c0_41], %93 {strides = array<i32>} : memref<64x32xbf16, #tpu.memory_space<vmem>>, vector<8x32xbf16>,
    %cst_42 = arith.constant dense<0.000000e+00> : vector<8x128xf32>
    %95 = tpu.matmul %69, %15, %cst_42 {dimension_numbers = #tpu.dot_dimension_numbers<[1], [0], [0], [1], [0, 0, 1, 1], [], []>} : vector<8x32xbf16>, vector<32x128xbf16>, vector<8x128xf32> -> vector<8x128xf32>
    %96 = vector.extract_strided_slice %13 {offsets = [16, 0], sizes = [8, 128], strides = [1, 1]} : vector<64x128xf32> to vector<8x128xf32>
    %97 = arith.addf %95, %96 : vector<8x128xf32>
    %98 = arith.negf %97 : vector<8x128xf32>
    %99 = math.exp %98 : vector<8x128xf32>
    %cst_43 = arith.constant 1.000000e+00 : f32
    %100 = vector.broadcast %cst_43 : f32 to vector<8x128xf32>
    %101 = arith.addf %100, %99 : vector<8x128xf32>
    %102 = arith.divf %100, %101 : vector<8x128xf32>
    %103 = vector.extract_strided_slice %102 {offsets = [0, 0], sizes = [8, 32], strides = [1, 1]} : vector<8x128xf32> to vector<8x32xf32>
    %104 = vector.extract_strided_slice %102 {offsets = [0, 32], sizes = [8, 32], strides = [1, 1]} : vector<8x128xf32> to vector<8x32xf32>
    %105 = vector.extract_strided_slice %102 {offsets = [0, 64], sizes = [8, 32], strides = [1, 1]} : vector<8x128xf32> to vector<8x32xf32>
    %cst_44 = arith.constant 2.000000e+00 : f32
    %106 = vector.broadcast %cst_44 : f32 to vector<8x32xf32>
    %107 = arith.mulf %106, %105 : vector<8x32xf32>
    %cst_45 = arith.constant 1.000000e+00 : f32
    %108 = vector.broadcast %cst_45 : f32 to vector<8x32xf32>
    %109 = arith.subf %107, %108 : vector<8x32xf32>
    %110 = vector.extract_strided_slice %102 {offsets = [0, 96], sizes = [8, 32], strides = [1, 1]} : vector<8x128xf32> to vector<8x32xf32>
    %111 = arith.mulf %104, %66 : vector<8x32xf32>
    %112 = arith.mulf %103, %109 : vector<8x32xf32>
    %113 = arith.addf %111, %112 : vector<8x32xf32>
    %114 = math.tanh %113 : vector<8x32xf32>
    %115 = arith.mulf %110, %114 : vector<8x32xf32>
    %116 = arith.truncf %115 : vector<8x32xf32> to vector<8x32xbf16>
    %cst_46 = arith.constant dense<0.000000e+00> : vector<8x128xf32>
    %117 = tpu.matmul %93, %17, %cst_46 {dimension_numbers = #tpu.dot_dimension_numbers<[1], [0], [0], [1], [0, 0, 1, 1], [], []>} : vector<8x32xbf16>, vector<32x128xbf16>, vector<8x128xf32> -> vector<8x128xf32>
    %cst_47 = arith.constant dense<0.000000e+00> : vector<8x128xf32>
    %118 = tpu.matmul %69, %19, %cst_47 {dimension_numbers = #tpu.dot_dimension_numbers<[1], [0], [0], [1], [0, 0, 1, 1], [], []>} : vector<8x32xbf16>, vector<32x128xbf16>, vector<8x128xf32> -> vector<8x128xf32>
    %119 = arith.addf %117, %118 : vector<8x128xf32>
    %120 = vector.broadcast %21 : vector<1x128xf32> to vector<8x128xf32>
    %121 = arith.addf %119, %120 : vector<8x128xf32>
    %122 = arith.negf %121 : vector<8x128xf32>
    %123 = math.exp %122 : vector<8x128xf32>
    %cst_48 = arith.constant 1.000000e+00 : f32
    %124 = vector.broadcast %cst_48 : f32 to vector<8x128xf32>
    %125 = arith.addf %124, %123 : vector<8x128xf32>
    %126 = arith.divf %124, %125 : vector<8x128xf32>
    %127 = vector.extract_strided_slice %126 {offsets = [0, 0], sizes = [8, 32], strides = [1, 1]} : vector<8x128xf32> to vector<8x32xf32>
    %128 = vector.extract_strided_slice %126 {offsets = [0, 32], sizes = [8, 32], strides = [1, 1]} : vector<8x128xf32> to vector<8x32xf32>
    %129 = vector.extract_strided_slice %126 {offsets = [0, 64], sizes = [8, 32], strides = [1, 1]} : vector<8x128xf32> to vector<8x32xf32>
    %cst_49 = arith.constant 2.000000e+00 : f32
    %130 = vector.broadcast %cst_49 : f32 to vector<8x32xf32>
    %131 = arith.mulf %130, %129 : vector<8x32xf32>
    %cst_50 = arith.constant 1.000000e+00 : f32
    %132 = vector.broadcast %cst_50 : f32 to vector<8x32xf32>
    %133 = arith.subf %131, %132 : vector<8x32xf32>
    %134 = vector.extract_strided_slice %126 {offsets = [0, 96], sizes = [8, 32], strides = [1, 1]} : vector<8x128xf32> to vector<8x32xf32>
    %135 = arith.mulf %128, %90 : vector<8x32xf32>
    %136 = arith.mulf %127, %133 : vector<8x32xf32>
    %137 = arith.addf %135, %136 : vector<8x32xf32>
    %138 = math.tanh %137 : vector<8x32xf32>
    %139 = arith.mulf %134, %138 : vector<8x32xf32>
    %140 = arith.truncf %139 : vector<8x32xf32> to vector<8x32xbf16>
    %c8 = arith.constant 8 : index
    %c0_51 = arith.constant 0 : index
    %141 = vector.load %arg11[%c8, %c0_51] : memref<64x32xbf16, #tpu.memory_space<vmem>>, vector<8x32xbf16>
    tpu.vector_store %arg11[%c8, %c0_51], %140 {strides = array<i32>} : memref<64x32xbf16, #tpu.memory_space<vmem>>, vector<8x32xbf16>,
    %cst_52 = arith.constant dense<0.000000e+00> : vector<8x128xf32>
    %142 = tpu.matmul %116, %15, %cst_52 {dimension_numbers = #tpu.dot_dimension_numbers<[1], [0], [0], [1], [0, 0, 1, 1], [], []>} : vector<8x32xbf16>, vector<32x128xbf16>, vector<8x128xf32> -> vector<8x128xf32>
    %143 = vector.extract_strided_slice %13 {offsets = [24, 0], sizes = [8, 128], strides = [1, 1]} : vector<64x128xf32> to vector<8x128xf32>
    %144 = arith.addf %142, %143 : vector<8x128xf32>
    %145 = arith.negf %144 : vector<8x128xf32>
    %146 = math.exp %145 : vector<8x128xf32>
    %cst_53 = arith.constant 1.000000e+00 : f32
    %147 = vector.broadcast %cst_53 : f32 to vector<8x128xf32>
    %148 = arith.addf %147, %146 : vector<8x128xf32>
    %149 = arith.divf %147, %148 : vector<8x128xf32>
    %150 = vector.extract_strided_slice %149 {offsets = [0, 0], sizes = [8, 32], strides = [1, 1]} : vector<8x128xf32> to vector<8x32xf32>
    %151 = vector.extract_strided_slice %149 {offsets = [0, 32], sizes = [8, 32], strides = [1, 1]} : vector<8x128xf32> to vector<8x32xf32>
    %152 = vector.extract_strided_slice %149 {offsets = [0, 64], sizes = [8, 32], strides = [1, 1]} : vector<8x128xf32> to vector<8x32xf32>
    %cst_54 = arith.constant 2.000000e+00 : f32
    %153 = vector.broadcast %cst_54 : f32 to vector<8x32xf32>
    %154 = arith.mulf %153, %152 : vector<8x32xf32>
    %cst_55 = arith.constant 1.000000e+00 : f32
    %155 = vector.broadcast %cst_55 : f32 to vector<8x32xf32>
    %156 = arith.subf %154, %155 : vector<8x32xf32>
    %157 = vector.extract_strided_slice %149 {offsets = [0, 96], sizes = [8, 32], strides = [1, 1]} : vector<8x128xf32> to vector<8x32xf32>
    %158 = arith.mulf %151, %113 : vector<8x32xf32>
    %159 = arith.mulf %150, %156 : vector<8x32xf32>
    %160 = arith.addf %158, %159 : vector<8x32xf32>
    %161 = math.tanh %160 : vector<8x32xf32>
    %162 = arith.mulf %157, %161 : vector<8x32xf32>
    %163 = arith.truncf %162 : vector<8x32xf32> to vector<8x32xbf16>
    %cst_56 = arith.constant dense<0.000000e+00> : vector<8x128xf32>
    %164 = tpu.matmul %140, %17, %cst_56 {dimension_numbers = #tpu.dot_dimension_numbers<[1], [0], [0], [1], [0, 0, 1, 1], [], []>} : vector<8x32xbf16>, vector<32x128xbf16>, vector<8x128xf32> -> vector<8x128xf32>
    %cst_57 = arith.constant dense<0.000000e+00> : vector<8x128xf32>
    %165 = tpu.matmul %116, %19, %cst_57 {dimension_numbers = #tpu.dot_dimension_numbers<[1], [0], [0], [1], [0, 0, 1, 1], [], []>} : vector<8x32xbf16>, vector<32x128xbf16>, vector<8x128xf32> -> vector<8x128xf32>
    %166 = arith.addf %164, %165 : vector<8x128xf32>
    %167 = vector.broadcast %21 : vector<1x128xf32> to vector<8x128xf32>
    %168 = arith.addf %166, %167 : vector<8x128xf32>
    %169 = arith.negf %168 : vector<8x128xf32>
    %170 = math.exp %169 : vector<8x128xf32>
    %cst_58 = arith.constant 1.000000e+00 : f32
    %171 = vector.broadcast %cst_58 : f32 to vector<8x128xf32>
    %172 = arith.addf %171, %170 : vector<8x128xf32>
    %173 = arith.divf %171, %172 : vector<8x128xf32>
    %174 = vector.extract_strided_slice %173 {offsets = [0, 0], sizes = [8, 32], strides = [1, 1]} : vector<8x128xf32> to vector<8x32xf32>
    %175 = vector.extract_strided_slice %173 {offsets = [0, 32], sizes = [8, 32], strides = [1, 1]} : vector<8x128xf32> to vector<8x32xf32>
    %176 = vector.extract_strided_slice %173 {offsets = [0, 64], sizes = [8, 32], strides = [1, 1]} : vector<8x128xf32> to vector<8x32xf32>
    %cst_59 = arith.constant 2.000000e+00 : f32
    %177 = vector.broadcast %cst_59 : f32 to vector<8x32xf32>
    %178 = arith.mulf %177, %176 : vector<8x32xf32>
    %cst_60 = arith.constant 1.000000e+00 : f32
    %179 = vector.broadcast %cst_60 : f32 to vector<8x32xf32>
    %180 = arith.subf %178, %179 : vector<8x32xf32>
    %181 = vector.extract_strided_slice %173 {offsets = [0, 96], sizes = [8, 32], strides = [1, 1]} : vector<8x128xf32> to vector<8x32xf32>
    %182 = arith.mulf %175, %137 : vector<8x32xf32>
    %183 = arith.mulf %174, %180 : vector<8x32xf32>
    %184 = arith.addf %182, %183 : vector<8x32xf32>
    %185 = math.tanh %184 : vector<8x32xf32>
    %186 = arith.mulf %181, %185 : vector<8x32xf32>
    %187 = arith.truncf %186 : vector<8x32xf32> to vector<8x32xbf16>
    %c16 = arith.constant 16 : index
    %c0_61 = arith.constant 0 : index
    %188 = vector.load %arg11[%c16, %c0_61] : memref<64x32xbf16, #tpu.memory_space<vmem>>, vector<8x32xbf16>
    tpu.vector_store %arg11[%c16, %c0_61], %187 {strides = array<i32>} : memref<64x32xbf16, #tpu.memory_space<vmem>>, vector<8x32xbf16>,
    %cst_62 = arith.constant dense<0.000000e+00> : vector<8x128xf32>
    %189 = tpu.matmul %163, %15, %cst_62 {dimension_numbers = #tpu.dot_dimension_numbers<[1], [0], [0], [1], [0, 0, 1, 1], [], []>} : vector<8x32xbf16>, vector<32x128xbf16>, vector<8x128xf32> -> vector<8x128xf32>
    %190 = vector.extract_strided_slice %13 {offsets = [32, 0], sizes = [8, 128], strides = [1, 1]} : vector<64x128xf32> to vector<8x128xf32>
    %191 = arith.addf %189, %190 : vector<8x128xf32>
    %192 = arith.negf %191 : vector<8x128xf32>
    %193 = math.exp %192 : vector<8x128xf32>
    %cst_63 = arith.constant 1.000000e+00 : f32
    %194 = vector.broadcast %cst_63 : f32 to vector<8x128xf32>
    %195 = arith.addf %194, %193 : vector<8x128xf32>
    %196 = arith.divf %194, %195 : vector<8x128xf32>
    %197 = vector.extract_strided_slice %196 {offsets = [0, 0], sizes = [8, 32], strides = [1, 1]} : vector<8x128xf32> to vector<8x32xf32>
    %198 = vector.extract_strided_slice %196 {offsets = [0, 32], sizes = [8, 32], strides = [1, 1]} : vector<8x128xf32> to vector<8x32xf32>
    %199 = vector.extract_strided_slice %196 {offsets = [0, 64], sizes = [8, 32], strides = [1, 1]} : vector<8x128xf32> to vector<8x32xf32>
    %cst_64 = arith.constant 2.000000e+00 : f32
    %200 = vector.broadcast %cst_64 : f32 to vector<8x32xf32>
    %201 = arith.mulf %200, %199 : vector<8x32xf32>
    %cst_65 = arith.constant 1.000000e+00 : f32
    %202 = vector.broadcast %cst_65 : f32 to vector<8x32xf32>
    %203 = arith.subf %201, %202 : vector<8x32xf32>
    %204 = vector.extract_strided_slice %196 {offsets = [0, 96], sizes = [8, 32], strides = [1, 1]} : vector<8x128xf32> to vector<8x32xf32>
    %205 = arith.mulf %198, %160 : vector<8x32xf32>
    %206 = arith.mulf %197, %203 : vector<8x32xf32>
    %207 = arith.addf %205, %206 : vector<8x32xf32>
    %208 = math.tanh %207 : vector<8x32xf32>
    %209 = arith.mulf %204, %208 : vector<8x32xf32>
    %210 = arith.truncf %209 : vector<8x32xf32> to vector<8x32xbf16>
    %cst_66 = arith.constant dense<0.000000e+00> : vector<8x128xf32>
    %211 = tpu.matmul %187, %17, %cst_66 {dimension_numbers = #tpu.dot_dimension_numbers<[1], [0], [0], [1], [0, 0, 1, 1], [], []>} : vector<8x32xbf16>, vector<32x128xbf16>, vector<8x128xf32> -> vector<8x128xf32>
    %cst_67 = arith.constant dense<0.000000e+00> : vector<8x128xf32>
    %212 = tpu.matmul %163, %19, %cst_67 {dimension_numbers = #tpu.dot_dimension_numbers<[1], [0], [0], [1], [0, 0, 1, 1], [], []>} : vector<8x32xbf16>, vector<32x128xbf16>, vector<8x128xf32> -> vector<8x128xf32>
    %213 = arith.addf %211, %212 : vector<8x128xf32>
    %214 = vector.broadcast %21 : vector<1x128xf32> to vector<8x128xf32>
    %215 = arith.addf %213, %214 : vector<8x128xf32>
    %216 = arith.negf %215 : vector<8x128xf32>
    %217 = math.exp %216 : vector<8x128xf32>
    %cst_68 = arith.constant 1.000000e+00 : f32
    %218 = vector.broadcast %cst_68 : f32 to vector<8x128xf32>
    %219 = arith.addf %218, %217 : vector<8x128xf32>
    %220 = arith.divf %218, %219 : vector<8x128xf32>
    %221 = vector.extract_strided_slice %220 {offsets = [0, 0], sizes = [8, 32], strides = [1, 1]} : vector<8x128xf32> to vector<8x32xf32>
    %222 = vector.extract_strided_slice %220 {offsets = [0, 32], sizes = [8, 32], strides = [1, 1]} : vector<8x128xf32> to vector<8x32xf32>
    %223 = vector.extract_strided_slice %220 {offsets = [0, 64], sizes = [8, 32], strides = [1, 1]} : vector<8x128xf32> to vector<8x32xf32>
    %cst_69 = arith.constant 2.000000e+00 : f32
    %224 = vector.broadcast %cst_69 : f32 to vector<8x32xf32>
    %225 = arith.mulf %224, %223 : vector<8x32xf32>
    %cst_70 = arith.constant 1.000000e+00 : f32
    %226 = vector.broadcast %cst_70 : f32 to vector<8x32xf32>
    %227 = arith.subf %225, %226 : vector<8x32xf32>
    %228 = vector.extract_strided_slice %220 {offsets = [0, 96], sizes = [8, 32], strides = [1, 1]} : vector<8x128xf32> to vector<8x32xf32>
    %229 = arith.mulf %222, %184 : vector<8x32xf32>
    %230 = arith.mulf %221, %227 : vector<8x32xf32>
    %231 = arith.addf %229, %230 : vector<8x32xf32>
    %232 = math.tanh %231 : vector<8x32xf32>
    %233 = arith.mulf %228, %232 : vector<8x32xf32>
    %234 = arith.truncf %233 : vector<8x32xf32> to vector<8x32xbf16>
    %c24 = arith.constant 24 : index
    %c0_71 = arith.constant 0 : index
    %235 = vector.load %arg11[%c24, %c0_71] : memref<64x32xbf16, #tpu.memory_space<vmem>>, vector<8x32xbf16>
    tpu.vector_store %arg11[%c24, %c0_71], %234 {strides = array<i32>} : memref<64x32xbf16, #tpu.memory_space<vmem>>, vector<8x32xbf16>,
    %cst_72 = arith.constant dense<0.000000e+00> : vector<8x128xf32>
    %236 = tpu.matmul %210, %15, %cst_72 {dimension_numbers = #tpu.dot_dimension_numbers<[1], [0], [0], [1], [0, 0, 1, 1], [], []>} : vector<8x32xbf16>, vector<32x128xbf16>, vector<8x128xf32> -> vector<8x128xf32>
    %237 = vector.extract_strided_slice %13 {offsets = [40, 0], sizes = [8, 128], strides = [1, 1]} : vector<64x128xf32> to vector<8x128xf32>
    %238 = arith.addf %236, %237 : vector<8x128xf32>
    %239 = arith.negf %238 : vector<8x128xf32>
    %240 = math.exp %239 : vector<8x128xf32>
    %cst_73 = arith.constant 1.000000e+00 : f32
    %241 = vector.broadcast %cst_73 : f32 to vector<8x128xf32>
    %242 = arith.addf %241, %240 : vector<8x128xf32>
    %243 = arith.divf %241, %242 : vector<8x128xf32>
    %244 = vector.extract_strided_slice %243 {offsets = [0, 0], sizes = [8, 32], strides = [1, 1]} : vector<8x128xf32> to vector<8x32xf32>
    %245 = vector.extract_strided_slice %243 {offsets = [0, 32], sizes = [8, 32], strides = [1, 1]} : vector<8x128xf32> to vector<8x32xf32>
    %246 = vector.extract_strided_slice %243 {offsets = [0, 64], sizes = [8, 32], strides = [1, 1]} : vector<8x128xf32> to vector<8x32xf32>
    %cst_74 = arith.constant 2.000000e+00 : f32
    %247 = vector.broadcast %cst_74 : f32 to vector<8x32xf32>
    %248 = arith.mulf %247, %246 : vector<8x32xf32>
    %cst_75 = arith.constant 1.000000e+00 : f32
    %249 = vector.broadcast %cst_75 : f32 to vector<8x32xf32>
    %250 = arith.subf %248, %249 : vector<8x32xf32>
    %251 = vector.extract_strided_slice %243 {offsets = [0, 96], sizes = [8, 32], strides = [1, 1]} : vector<8x128xf32> to vector<8x32xf32>
    %252 = arith.mulf %245, %207 : vector<8x32xf32>
    %253 = arith.mulf %244, %250 : vector<8x32xf32>
    %254 = arith.addf %252, %253 : vector<8x32xf32>
    %255 = math.tanh %254 : vector<8x32xf32>
    %256 = arith.mulf %251, %255 : vector<8x32xf32>
    %257 = arith.truncf %256 : vector<8x32xf32> to vector<8x32xbf16>
    %cst_76 = arith.constant dense<0.000000e+00> : vector<8x128xf32>
    %258 = tpu.matmul %234, %17, %cst_76 {dimension_numbers = #tpu.dot_dimension_numbers<[1], [0], [0], [1], [0, 0, 1, 1], [], []>} : vector<8x32xbf16>, vector<32x128xbf16>, vector<8x128xf32> -> vector<8x128xf32>
    %cst_77 = arith.constant dense<0.000000e+00> : vector<8x128xf32>
    %259 = tpu.matmul %210, %19, %cst_77 {dimension_numbers = #tpu.dot_dimension_numbers<[1], [0], [0], [1], [0, 0, 1, 1], [], []>} : vector<8x32xbf16>, vector<32x128xbf16>, vector<8x128xf32> -> vector<8x128xf32>
    %260 = arith.addf %258, %259 : vector<8x128xf32>
    %261 = vector.broadcast %21 : vector<1x128xf32> to vector<8x128xf32>
    %262 = arith.addf %260, %261 : vector<8x128xf32>
    %263 = arith.negf %262 : vector<8x128xf32>
    %264 = math.exp %263 : vector<8x128xf32>
    %cst_78 = arith.constant 1.000000e+00 : f32
    %265 = vector.broadcast %cst_78 : f32 to vector<8x128xf32>
    %266 = arith.addf %265, %264 : vector<8x128xf32>
    %267 = arith.divf %265, %266 : vector<8x128xf32>
    %268 = vector.extract_strided_slice %267 {offsets = [0, 0], sizes = [8, 32], strides = [1, 1]} : vector<8x128xf32> to vector<8x32xf32>
    %269 = vector.extract_strided_slice %267 {offsets = [0, 32], sizes = [8, 32], strides = [1, 1]} : vector<8x128xf32> to vector<8x32xf32>
    %270 = vector.extract_strided_slice %267 {offsets = [0, 64], sizes = [8, 32], strides = [1, 1]} : vector<8x128xf32> to vector<8x32xf32>
    %cst_79 = arith.constant 2.000000e+00 : f32
    %271 = vector.broadcast %cst_79 : f32 to vector<8x32xf32>
    %272 = arith.mulf %271, %270 : vector<8x32xf32>
    %cst_80 = arith.constant 1.000000e+00 : f32
    %273 = vector.broadcast %cst_80 : f32 to vector<8x32xf32>
    %274 = arith.subf %272, %273 : vector<8x32xf32>
    %275 = vector.extract_strided_slice %267 {offsets = [0, 96], sizes = [8, 32], strides = [1, 1]} : vector<8x128xf32> to vector<8x32xf32>
    %276 = arith.mulf %269, %231 : vector<8x32xf32>
    %277 = arith.mulf %268, %274 : vector<8x32xf32>
    %278 = arith.addf %276, %277 : vector<8x32xf32>
    %279 = math.tanh %278 : vector<8x32xf32>
    %280 = arith.mulf %275, %279 : vector<8x32xf32>
    %281 = arith.truncf %280 : vector<8x32xf32> to vector<8x32xbf16>
    %c32 = arith.constant 32 : index
    %c0_81 = arith.constant 0 : index
    %282 = vector.load %arg11[%c32, %c0_81] : memref<64x32xbf16, #tpu.memory_space<vmem>>, vector<8x32xbf16>
    tpu.vector_store %arg11[%c32, %c0_81], %281 {strides = array<i32>} : memref<64x32xbf16, #tpu.memory_space<vmem>>, vector<8x32xbf16>,
    %cst_82 = arith.constant dense<0.000000e+00> : vector<8x128xf32>
    %283 = tpu.matmul %257, %15, %cst_82 {dimension_numbers = #tpu.dot_dimension_numbers<[1], [0], [0], [1], [0, 0, 1, 1], [], []>} : vector<8x32xbf16>, vector<32x128xbf16>, vector<8x128xf32> -> vector<8x128xf32>
    %284 = vector.extract_strided_slice %13 {offsets = [48, 0], sizes = [8, 128], strides = [1, 1]} : vector<64x128xf32> to vector<8x128xf32>
    %285 = arith.addf %283, %284 : vector<8x128xf32>
    %286 = arith.negf %285 : vector<8x128xf32>
    %287 = math.exp %286 : vector<8x128xf32>
    %cst_83 = arith.constant 1.000000e+00 : f32
    %288 = vector.broadcast %cst_83 : f32 to vector<8x128xf32>
    %289 = arith.addf %288, %287 : vector<8x128xf32>
    %290 = arith.divf %288, %289 : vector<8x128xf32>
    %291 = vector.extract_strided_slice %290 {offsets = [0, 0], sizes = [8, 32], strides = [1, 1]} : vector<8x128xf32> to vector<8x32xf32>
    %292 = vector.extract_strided_slice %290 {offsets = [0, 32], sizes = [8, 32], strides = [1, 1]} : vector<8x128xf32> to vector<8x32xf32>
    %293 = vector.extract_strided_slice %290 {offsets = [0, 64], sizes = [8, 32], strides = [1, 1]} : vector<8x128xf32> to vector<8x32xf32>
    %cst_84 = arith.constant 2.000000e+00 : f32
    %294 = vector.broadcast %cst_84 : f32 to vector<8x32xf32>
    %295 = arith.mulf %294, %293 : vector<8x32xf32>
    %cst_85 = arith.constant 1.000000e+00 : f32
    %296 = vector.broadcast %cst_85 : f32 to vector<8x32xf32>
    %297 = arith.subf %295, %296 : vector<8x32xf32>
    %298 = vector.extract_strided_slice %290 {offsets = [0, 96], sizes = [8, 32], strides = [1, 1]} : vector<8x128xf32> to vector<8x32xf32>
    %299 = arith.mulf %292, %254 : vector<8x32xf32>
    %300 = arith.mulf %291, %297 : vector<8x32xf32>
    %301 = arith.addf %299, %300 : vector<8x32xf32>
    %302 = math.tanh %301 : vector<8x32xf32>
    %303 = arith.mulf %298, %302 : vector<8x32xf32>
    %304 = arith.truncf %303 : vector<8x32xf32> to vector<8x32xbf16>
    %cst_86 = arith.constant dense<0.000000e+00> : vector<8x128xf32>
    %305 = tpu.matmul %281, %17, %cst_86 {dimension_numbers = #tpu.dot_dimension_numbers<[1], [0], [0], [1], [0, 0, 1, 1], [], []>} : vector<8x32xbf16>, vector<32x128xbf16>, vector<8x128xf32> -> vector<8x128xf32>
    %cst_87 = arith.constant dense<0.000000e+00> : vector<8x128xf32>
    %306 = tpu.matmul %257, %19, %cst_87 {dimension_numbers = #tpu.dot_dimension_numbers<[1], [0], [0], [1], [0, 0, 1, 1], [], []>} : vector<8x32xbf16>, vector<32x128xbf16>, vector<8x128xf32> -> vector<8x128xf32>
    %307 = arith.addf %305, %306 : vector<8x128xf32>
    %308 = vector.broadcast %21 : vector<1x128xf32> to vector<8x128xf32>
    %309 = arith.addf %307, %308 : vector<8x128xf32>
    %310 = arith.negf %309 : vector<8x128xf32>
    %311 = math.exp %310 : vector<8x128xf32>
    %cst_88 = arith.constant 1.000000e+00 : f32
    %312 = vector.broadcast %cst_88 : f32 to vector<8x128xf32>
    %313 = arith.addf %312, %311 : vector<8x128xf32>
    %314 = arith.divf %312, %313 : vector<8x128xf32>
    %315 = vector.extract_strided_slice %314 {offsets = [0, 0], sizes = [8, 32], strides = [1, 1]} : vector<8x128xf32> to vector<8x32xf32>
    %316 = vector.extract_strided_slice %314 {offsets = [0, 32], sizes = [8, 32], strides = [1, 1]} : vector<8x128xf32> to vector<8x32xf32>
    %317 = vector.extract_strided_slice %314 {offsets = [0, 64], sizes = [8, 32], strides = [1, 1]} : vector<8x128xf32> to vector<8x32xf32>
    %cst_89 = arith.constant 2.000000e+00 : f32
    %318 = vector.broadcast %cst_89 : f32 to vector<8x32xf32>
    %319 = arith.mulf %318, %317 : vector<8x32xf32>
    %cst_90 = arith.constant 1.000000e+00 : f32
    %320 = vector.broadcast %cst_90 : f32 to vector<8x32xf32>
    %321 = arith.subf %319, %320 : vector<8x32xf32>
    %322 = vector.extract_strided_slice %314 {offsets = [0, 96], sizes = [8, 32], strides = [1, 1]} : vector<8x128xf32> to vector<8x32xf32>
    %323 = arith.mulf %316, %278 : vector<8x32xf32>
    %324 = arith.mulf %315, %321 : vector<8x32xf32>
    %325 = arith.addf %323, %324 : vector<8x32xf32>
    %326 = math.tanh %325 : vector<8x32xf32>
    %327 = arith.mulf %322, %326 : vector<8x32xf32>
    %328 = arith.truncf %327 : vector<8x32xf32> to vector<8x32xbf16>
    %c40 = arith.constant 40 : index
    %c0_91 = arith.constant 0 : index
    %329 = vector.load %arg11[%c40, %c0_91] : memref<64x32xbf16, #tpu.memory_space<vmem>>, vector<8x32xbf16>
    tpu.vector_store %arg11[%c40, %c0_91], %328 {strides = array<i32>} : memref<64x32xbf16, #tpu.memory_space<vmem>>, vector<8x32xbf16>,
    %cst_92 = arith.constant dense<0.000000e+00> : vector<8x128xf32>
    %330 = tpu.matmul %304, %15, %cst_92 {dimension_numbers = #tpu.dot_dimension_numbers<[1], [0], [0], [1], [0, 0, 1, 1], [], []>} : vector<8x32xbf16>, vector<32x128xbf16>, vector<8x128xf32> -> vector<8x128xf32>
    %331 = vector.extract_strided_slice %13 {offsets = [56, 0], sizes = [8, 128], strides = [1, 1]} : vector<64x128xf32> to vector<8x128xf32>
    %332 = arith.addf %330, %331 : vector<8x128xf32>
    %333 = arith.negf %332 : vector<8x128xf32>
    %334 = math.exp %333 : vector<8x128xf32>
    %cst_93 = arith.constant 1.000000e+00 : f32
    %335 = vector.broadcast %cst_93 : f32 to vector<8x128xf32>
    %336 = arith.addf %335, %334 : vector<8x128xf32>
    %337 = arith.divf %335, %336 : vector<8x128xf32>
    %338 = vector.extract_strided_slice %337 {offsets = [0, 0], sizes = [8, 32], strides = [1, 1]} : vector<8x128xf32> to vector<8x32xf32>
    %339 = vector.extract_strided_slice %337 {offsets = [0, 32], sizes = [8, 32], strides = [1, 1]} : vector<8x128xf32> to vector<8x32xf32>
    %340 = vector.extract_strided_slice %337 {offsets = [0, 64], sizes = [8, 32], strides = [1, 1]} : vector<8x128xf32> to vector<8x32xf32>
    %cst_94 = arith.constant 2.000000e+00 : f32
    %341 = vector.broadcast %cst_94 : f32 to vector<8x32xf32>
    %342 = arith.mulf %341, %340 : vector<8x32xf32>
    %cst_95 = arith.constant 1.000000e+00 : f32
    %343 = vector.broadcast %cst_95 : f32 to vector<8x32xf32>
    %344 = arith.subf %342, %343 : vector<8x32xf32>
    %345 = vector.extract_strided_slice %337 {offsets = [0, 96], sizes = [8, 32], strides = [1, 1]} : vector<8x128xf32> to vector<8x32xf32>
    %346 = arith.mulf %339, %301 : vector<8x32xf32>
    %347 = arith.mulf %338, %344 : vector<8x32xf32>
    %348 = arith.addf %346, %347 : vector<8x32xf32>
    %349 = math.tanh %348 : vector<8x32xf32>
    %350 = arith.mulf %345, %349 : vector<8x32xf32>
    %351 = arith.truncf %350 : vector<8x32xf32> to vector<8x32xbf16>
    %c0_96 = arith.constant 0 : index
    %c0_97 = arith.constant 0 : index
    %c0_98 = arith.constant 0 : index
    %352 = vector.load %arg9[%c0_96, %c0_97, %c0_98] : memref<2x8x32xf32, #tpu.memory_space<vmem>>, vector<1x8x32xf32>
    %353 = vector.shape_cast %352 : vector<1x8x32xf32> to vector<8x32xf32>
    %354 = vector.shape_cast %350 : vector<8x32xf32> to vector<1x8x32xf32>
    tpu.vector_store %arg9[%c0_96, %c0_97, %c0_98], %354 {strides = array<i32>} : memref<2x8x32xf32, #tpu.memory_space<vmem>>, vector<1x8x32xf32>,
    %c0_99 = arith.constant 0 : index
    %c0_100 = arith.constant 0 : index
    %c0_101 = arith.constant 0 : index
    %355 = vector.load %arg10[%c0_99, %c0_100, %c0_101] : memref<2x8x32xf32, #tpu.memory_space<vmem>>, vector<1x8x32xf32>
    %356 = vector.shape_cast %355 : vector<1x8x32xf32> to vector<8x32xf32>
    %357 = vector.shape_cast %348 : vector<8x32xf32> to vector<1x8x32xf32>
    tpu.vector_store %arg10[%c0_99, %c0_100, %c0_101], %357 {strides = array<i32>} : memref<2x8x32xf32, #tpu.memory_space<vmem>>, vector<1x8x32xf32>,
    %cst_102 = arith.constant dense<0.000000e+00> : vector<8x128xf32>
    %358 = tpu.matmul %328, %17, %cst_102 {dimension_numbers = #tpu.dot_dimension_numbers<[1], [0], [0], [1], [0, 0, 1, 1], [], []>} : vector<8x32xbf16>, vector<32x128xbf16>, vector<8x128xf32> -> vector<8x128xf32>
    %cst_103 = arith.constant dense<0.000000e+00> : vector<8x128xf32>
    %359 = tpu.matmul %304, %19, %cst_103 {dimension_numbers = #tpu.dot_dimension_numbers<[1], [0], [0], [1], [0, 0, 1, 1], [], []>} : vector<8x32xbf16>, vector<32x128xbf16>, vector<8x128xf32> -> vector<8x128xf32>
    %360 = arith.addf %358, %359 : vector<8x128xf32>
    %361 = vector.broadcast %21 : vector<1x128xf32> to vector<8x128xf32>
    %362 = arith.addf %360, %361 : vector<8x128xf32>
    %363 = arith.negf %362 : vector<8x128xf32>
    %364 = math.exp %363 : vector<8x128xf32>
    %cst_104 = arith.constant 1.000000e+00 : f32
    %365 = vector.broadcast %cst_104 : f32 to vector<8x128xf32>
    %366 = arith.addf %365, %364 : vector<8x128xf32>
    %367 = arith.divf %365, %366 : vector<8x128xf32>
    %368 = vector.extract_strided_slice %367 {offsets = [0, 0], sizes = [8, 32], strides = [1, 1]} : vector<8x128xf32> to vector<8x32xf32>
    %369 = vector.extract_strided_slice %367 {offsets = [0, 32], sizes = [8, 32], strides = [1, 1]} : vector<8x128xf32> to vector<8x32xf32>
    %370 = vector.extract_strided_slice %367 {offsets = [0, 64], sizes = [8, 32], strides = [1, 1]} : vector<8x128xf32> to vector<8x32xf32>
    %cst_105 = arith.constant 2.000000e+00 : f32
    %371 = vector.broadcast %cst_105 : f32 to vector<8x32xf32>
    %372 = arith.mulf %371, %370 : vector<8x32xf32>
    %cst_106 = arith.constant 1.000000e+00 : f32
    %373 = vector.broadcast %cst_106 : f32 to vector<8x32xf32>
    %374 = arith.subf %372, %373 : vector<8x32xf32>
    %375 = vector.extract_strided_slice %367 {offsets = [0, 96], sizes = [8, 32], strides = [1, 1]} : vector<8x128xf32> to vector<8x32xf32>
    %376 = arith.mulf %369, %325 : vector<8x32xf32>
    %377 = arith.mulf %368, %374 : vector<8x32xf32>
    %378 = arith.addf %376, %377 : vector<8x32xf32>
    %379 = math.tanh %378 : vector<8x32xf32>
    %380 = arith.mulf %375, %379 : vector<8x32xf32>
    %381 = arith.truncf %380 : vector<8x32xf32> to vector<8x32xbf16>
    %c48 = arith.constant 48 : index
    %c0_107 = arith.constant 0 : index
    %382 = vector.load %arg11[%c48, %c0_107] : memref<64x32xbf16, #tpu.memory_space<vmem>>, vector<8x32xbf16>
    tpu.vector_store %arg11[%c48, %c0_107], %381 {strides = array<i32>} : memref<64x32xbf16, #tpu.memory_space<vmem>>, vector<8x32xbf16>,
    %cst_108 = arith.constant dense<0.000000e+00> : vector<8x128xf32>
    %383 = tpu.matmul %381, %17, %cst_108 {dimension_numbers = #tpu.dot_dimension_numbers<[1], [0], [0], [1], [0, 0, 1, 1], [], []>} : vector<8x32xbf16>, vector<32x128xbf16>, vector<8x128xf32> -> vector<8x128xf32>
    %cst_109 = arith.constant dense<0.000000e+00> : vector<8x128xf32>
    %384 = tpu.matmul %351, %19, %cst_109 {dimension_numbers = #tpu.dot_dimension_numbers<[1], [0], [0], [1], [0, 0, 1, 1], [], []>} : vector<8x32xbf16>, vector<32x128xbf16>, vector<8x128xf32> -> vector<8x128xf32>
    %385 = arith.addf %383, %384 : vector<8x128xf32>
    %386 = vector.broadcast %21 : vector<1x128xf32> to vector<8x128xf32>
    %387 = arith.addf %385, %386 : vector<8x128xf32>
    %388 = arith.negf %387 : vector<8x128xf32>
    %389 = math.exp %388 : vector<8x128xf32>
    %cst_110 = arith.constant 1.000000e+00 : f32
    %390 = vector.broadcast %cst_110 : f32 to vector<8x128xf32>
    %391 = arith.addf %390, %389 : vector<8x128xf32>
    %392 = arith.divf %390, %391 : vector<8x128xf32>
    %393 = vector.extract_strided_slice %392 {offsets = [0, 0], sizes = [8, 32], strides = [1, 1]} : vector<8x128xf32> to vector<8x32xf32>
    %394 = vector.extract_strided_slice %392 {offsets = [0, 32], sizes = [8, 32], strides = [1, 1]} : vector<8x128xf32> to vector<8x32xf32>
    %395 = vector.extract_strided_slice %392 {offsets = [0, 64], sizes = [8, 32], strides = [1, 1]} : vector<8x128xf32> to vector<8x32xf32>
    %cst_111 = arith.constant 2.000000e+00 : f32
    %396 = vector.broadcast %cst_111 : f32 to vector<8x32xf32>
    %397 = arith.mulf %396, %395 : vector<8x32xf32>
    %cst_112 = arith.constant 1.000000e+00 : f32
    %398 = vector.broadcast %cst_112 : f32 to vector<8x32xf32>
    %399 = arith.subf %397, %398 : vector<8x32xf32>
    %400 = vector.extract_strided_slice %392 {offsets = [0, 96], sizes = [8, 32], strides = [1, 1]} : vector<8x128xf32> to vector<8x32xf32>
    %401 = arith.mulf %394, %378 : vector<8x32xf32>
    %402 = arith.mulf %393, %399 : vector<8x32xf32>
    %403 = arith.addf %401, %402 : vector<8x32xf32>
    %404 = math.tanh %403 : vector<8x32xf32>
    %405 = arith.mulf %400, %404 : vector<8x32xf32>
    %406 = arith.truncf %405 : vector<8x32xf32> to vector<8x32xbf16>
    %c56 = arith.constant 56 : index
    %c0_113 = arith.constant 0 : index
    %407 = vector.load %arg11[%c56, %c0_113] : memref<64x32xbf16, #tpu.memory_space<vmem>>, vector<8x32xbf16>
    tpu.vector_store %arg11[%c56, %c0_113], %406 {strides = array<i32>} : memref<64x32xbf16, #tpu.memory_space<vmem>>, vector<8x32xbf16>,
    %c1_114 = arith.constant 1 : index
    %c0_115 = arith.constant 0 : index
    %c0_116 = arith.constant 0 : index
    %408 = vector.load %arg9[%c1_114, %c0_115, %c0_116] : memref<2x8x32xf32, #tpu.memory_space<vmem>>, vector<1x8x32xf32>
    %409 = vector.shape_cast %408 : vector<1x8x32xf32> to vector<8x32xf32>
    %410 = vector.shape_cast %405 : vector<8x32xf32> to vector<1x8x32xf32>
    tpu.vector_store %arg9[%c1_114, %c0_115, %c0_116], %410 {strides = array<i32>} : memref<2x8x32xf32, #tpu.memory_space<vmem>>, vector<1x8x32xf32>,
    %c1_117 = arith.constant 1 : index
    %c0_118 = arith.constant 0 : index
    %c0_119 = arith.constant 0 : index
    %411 = vector.load %arg10[%c1_117, %c0_118, %c0_119] : memref<2x8x32xf32, #tpu.memory_space<vmem>>, vector<1x8x32xf32>
    %412 = vector.shape_cast %411 : vector<1x8x32xf32> to vector<8x32xf32>
    %413 = vector.shape_cast %403 : vector<8x32xf32> to vector<1x8x32xf32>
    tpu.vector_store %arg10[%c1_117, %c0_118, %c0_119], %413 {strides = array<i32>} : memref<2x8x32xf32, #tpu.memory_space<vmem>>, vector<1x8x32xf32>,
    %c0_120 = arith.constant 0 : index
    %c0_121 = arith.constant 0 : index
    %414 = vector.load %arg11[%c0_120, %c0_121] : memref<64x32xbf16, #tpu.memory_space<vmem>>, vector<64x32xbf16>
    %c0_122 = arith.constant 0 : index
    %c0_123 = arith.constant 0 : index
    %415 = vector.load %arg6[%c0_122, %c0_123] : memref<32x128xbf16, #tpu.memory_space<vmem>>, vector<32x128xbf16>
    %cst_124 = arith.constant dense<0.000000e+00> : vector<64x128xf32>
    %416 = tpu.matmul %414, %415, %cst_124 {dimension_numbers = #tpu.dot_dimension_numbers<[1], [0], [0], [1], [0, 0, 1, 1], [], []>} : vector<64x32xbf16>, vector<32x128xbf16>, vector<64x128xf32> -> vector<64x128xf32>
    %c0_125 = arith.constant 0 : index
    %c0_126 = arith.constant 0 : index
    %417 = vector.load %arg7[%c0_125, %c0_126] : memref<1x128xf32, #tpu.memory_space<vmem>>, vector<1x128xf32>
    %418 = vector.broadcast %417 : vector<1x128xf32> to vector<64x128xf32>
    %419 = arith.addf %416, %418 : vector<64x128xf32>
    %c0_127 = arith.constant 0 : index
    %c0_128 = arith.constant 0 : index
    %420 = vector.load %arg8[%c0_127, %c0_128] : memref<64x128xf32, #tpu.memory_space<vmem>>, vector<64x128xf32>
    tpu.vector_store %arg8[%c0_127, %c0_128], %419 {strides = array<i32>} : memref<64x128xf32, #tpu.memory_space<vmem>>, vector<64x128xf32>,
    return
  }
}

</mosaic_0001>

<bundles_post_ra>
// kernel: tpu_custom_call.1
= control target key start
LH: loop header
LB: loop body
LE: loop exit
PB: predicated region body
PF: predicated region fallthrough
CT: control target
= control target key end

     0   :  { %16 = vsyncpa [#allocation4], 0  ;;  %s2481_s0 = inlined_call_operand.vmem [shape: bf16[64,128], index: 0, kind: input, shape index: {}]   ;;  %s2482_s1 = inlined_call_operand.vmem [shape: bf16[128,32], index: 1, kind: input, shape index: {}]   ;;  %s2483_s2 = inlined_call_operand.hbm [shape: f32[1,32], index: 2, kind: input, shape index: {}]   ;;  %s2484_s3 = inlined_call_operand.vmem [shape: bf16[2,32,128], index: 3, kind: input, shape index: {}]   ;;  %s2485_s4 = inlined_call_operand.hbm [shape: bf16[2,32,128], index: 4, kind: input, shape index: {}]   ;;  %s2486_s5 = inlined_call_operand.vmem [shape: f32[2,1,128], index: 5, kind: input, shape index: {}]   ;;  %s2487_s6 = inlined_call_operand.vmem [shape: bf16[32,128], index: 6, kind: input, shape index: {}]   ;;  %s2488_s7 = inlined_call_operand.vmem [shape: f32[1,128], index: 7, kind: input, shape index: {}]   ;;  %s2489_s8 = inlined_call_operand.hbm [shape: f32[64,128], index: 8, kind: output, shape index: {0}]   ;;  %s2490_s9 = inlined_call_operand.hbm [shape: f32[2,8,32], index: 9, kind: output, shape index: {1}]   ;;  %s2491_s10 = inlined_call_operand.hbm [shape: f32[2,8,32], index: 10, kind: output, shape index: {2}]  }
   0x1   :  { %17 = vsyncpa [#allocation7], 0 }
   0x2   :  { %18 = vsyncpa [#allocation5], 0 }
   0x3   :  { %19 = vsyncpa [#allocation10], 0  ;;  %s29_s15 = sshll.u32 %s2483_s2, 4  ;;  %s2015_s16 = smov [#allocation3]   ;;  %s30_s15 = int_to_ptr.hbm [resolvable:$true] %s29_s15 }
   0x4   :  { %s31_s17 = sshll.u32 %s2015_s16, 4  ;;  %s41_s20 = sshll.u32 %s2485_s4, 4  ;;  %s32_s17 = int_to_ptr.vmem [resolvable:$true] %s31_s17  ;;  %s42_s20 = int_to_ptr.hbm [resolvable:$true] %s41_s20 }
   0x5   :  { %34 = dma.hbm_to_vmem [thread:$0]  %s30_s15, 16, %s32_s17, [#allocation4]  }
   0x6   :  { %s2016_s21 = smov [#allocation6]   ;;  %s2017_s23 = smov 64  }
   0x7   :  { %s43_s22 = sshll.u32 %s2016_s21, 4  ;;  %s2018_s24 = smov 4   ;;  %s44_s22 = int_to_ptr.vmem [resolvable:$true] %s43_s22 }
   0x8   :  { %49 = dma.hbm_to_vmem [thread:$0]  %s42_s20, 512, %s44_s22, [#allocation7], %s2017_s23, %s2017_s23, %s2018_s24  }
   0x9   :  { %2007 = dma.done.wait [#allocation4], 16  }
   0xa   :  { %2008 = vsyncadd [#allocation4], 4294967280 }
   0xb   :  { %2009 = dma.done.wait [#allocation7], 512  }
   0xc   :  { %2010 = vsyncadd [#allocation7], 4294966784  ;;  %v1756_v0 = vld [vmem:[%s2482_s1 + $0x38] sm:$0xff]  ;;  %v1755_v1 = vld [vmem:[%s2482_s1 + $0x30] sm:$0xff]  ;;  %v2019_v15 = vmov 0   ;;  %vm218_vm0 = vcmask 261120  }
   0xd   :  { %165 = vmatpush.bf16.msra.mxu0 %v1756_v0  ;;  %v1754_v2 = vld [vmem:[%s2482_s1 + $0x28] sm:$0xff]  ;;  %v1753_v3 = vld [vmem:[%s2482_s1 + $0x20] sm:$0xff]  ;;  %v1752_v4 = vld [vmem:[%s2482_s1 + $0x18] sm:$0xff]  ;;  %s2020_s30 = smov 32   ;;  %s2022_s24 = smov [#allocation9]  }
   0xe   :  { %v2105_v5 = vld [vmem:[#allocation6 + $0x8] sm:$0xff]  ;;  %v1749_v8 = vld [vmem:[%s2482_s1] sm:$0xff]  ;;  %v1748_v13 = vld [vmem:[%s2481_s0 + $0x18] sm:$0xff]  ;;  %s1538_s4 = sshll.u32 %s2490_s9, 4  ;;  %s2023_s26 = smov 128   ;;  %s1539_s4 = int_to_ptr.hbm [resolvable:$true] %s1538_s4 }
   0xf   :  { %v1751_v6 = vld [vmem:[%s2482_s1 + $0x10] sm:$0xff]  ;;  %355 = vmatpush.bf16.msra.mxu3 %v2105_v5  ;;  %v1750_v7 = vld [vmem:[%s2482_s1 + $0x8] sm:$0xff]  ;;  %v1745_v9 = vld [vmem:[%s2481_s0] sm:$0xff]  ;;  %s2024_s27 = smov 8   ;;  %s2025_s28 = smov [#allocation11]  }
  0x10   :  { %v1746_v10 = vld [vmem:[%s2481_s0 + $0x8] sm:$0xff]  ;;  %v1747_v12 = vld [vmem:[%s2481_s0 + $0x10] sm:$0xff]  ;;  %v1757_v16 = vld [vmem:[%s2484_s3] sm:$0xff]  ;;  %s1549_s0 = sshll.u32 %s2025_s28, 4  ;;  %s1551_s11 = sshll.u32 %s2491_s10, 4  ;;  %s1550_s0 = int_to_ptr.vmem [resolvable:$true] %s1549_s0  ;;  %s1552_s11 = int_to_ptr.hbm [resolvable:$true] %s1551_s11 }
  0x11   :  { %166 = vmatpush.bf16.msra.mxu0 %v1755_v1  ;;  %v2124_v11 = vld [vmem:[#allocation6] sm:$0xff]  ;;  %v1785_v18 = vld [vmem:[#allocation3] ss:$0 sm:$0xff]  ;;  %s2026_s9 = smov [#allocation8]   ;;  %s1525_s14 = sshll.u32 %s2489_s8, 4  ;;  %s1526_s14 = int_to_ptr.hbm [resolvable:$true] %s1525_s14 }
  0x12   :  { %v1758_v14 = vld [vmem:[%s2484_s3 + $0x8] sm:$0xff]  ;;  %v2148_v40 = vld [vmem:[%s2486_s5] ss:$0 sm:$0xff]  ;;  %s1523_s10 = sshll.u32 %s2026_s9, 4  ;;  %s1524_s10 = int_to_ptr.vmem [resolvable:$true] %s1523_s10 }
  0x13   :  { %356 = vmatpush.bf16.msra.mxu3 %v2124_v11  ;;  %237 = vmatpush.bf16.msra.mxu1 %v1758_v14 }
  0x15   :  { %167 = vmatpush.bf16.msra.mxu0 %v1754_v2 }
  0x17   :  { %238 = vmatpush.bf16.msra.mxu1 %v1757_v16 }
  0x19   :  { %168 = vmatpush.bf16.msra.mxu0 %v1753_v3 }
  0x1d   :  { %169 = vmatpush.bf16.msra.mxu0 %v1752_v4 }
  0x21   :  { %170 = vmatpush.bf16.msra.mxu0 %v1751_v6 }
  0x25   :  { %171 = vmatpush.bf16.msra.mxu0 %v1750_v7 }
  0x29   :  { %172 = vmatpush.bf16.msra.mxu0 %v1749_v8 }
  0x2c   :  { %173 = vmatmul.bf16.vlgmr.msra.gmra.mxu0 %v1745_v9 }
  0x2d   :  { %297 = vmatpush.bf16.msrb.mxu0 %v2105_v5 }
  0x31   :  { %298 = vmatpush.bf16.msrb.mxu0 %v2124_v11 }
  0x3c   :  { %178 = vmatmul.bf16.gmra.mxu0 %v1746_v10 }
  0x4c   :  { %183 = vmatmul.bf16.gmra.mxu0 %v1747_v12  ;;  %v2175_v12 = vld [vmem:[%s2484_s3 + $0x18] sm:$0xff] }
  0x4d   :  { %419 = vmatpush.bf16.msra.mxu2 %v2175_v12  ;;  %700 = vmatpush.bf16.msrb.mxu1 %v2175_v12 }
  0x4e   :  { %972 = vmatpush.bf16.msra.mxu0 %v2175_v12 }
  0x5c   :  { %188 = vmatmul.bf16.gmra.mxu0 %v1748_v13  ;;  %v2181_v13 = vld [vmem:[%s2484_s3 + $0x10] sm:$0xff] }
  0x5d   :  { %420 = vmatpush.bf16.msra.mxu2 %v2181_v13  ;;  %701 = vmatpush.bf16.msrb.mxu1 %v2181_v13 }
  0x5e   :  { %973 = vmatpush.bf16.msra.mxu0 %v2181_v13 }
  0x61   :  { %512 = vmatpush.bf16.msrb.mxu2 %v2105_v5 }
  0x65   :  { %513 = vmatpush.bf16.msrb.mxu2 %v2124_v11 }
  0x6c   :  { %299 = vmatmul.bf16.vlgmr.msrb.gmra.mxu0 %v2019_v15 }
  0xa9   :  { %v174_v17 = vpop.f32.mrf.mxu0 }
  0xaa   :  { %v175_v20 = vadd.f32 %v1785_v18, %v174_v17 }
  0xb1   :  { %v176_v19 = vpop.f32.mrf.mxu0 }
  0xb2   :  { %v177_v21 = vadd.f32 %v1785_v18, %v176_v19  ;;  %v2196_v19 = vld [vmem:[#allocation6 + $0x10] sm:$0xff] }
  0xb4   :  { %v194_v22 = vpack.c.bf16 %v177_v21, %v175_v20 }
  0xb6   :  { %1630 = vmatmul.msk.bf16.vlgmr.msra.gmra.mxu1 %vm218_vm0, %v194_v22 }
  0xb7   :  { %836 = vmatpush.bf16.msra.mxu1 %v2175_v12 }
  0xb9   :  { %v179_v23 = vpop.f32.mrf.mxu0 }
  0xba   :  { %v180_v24 = vadd.f32 %v1785_v18, %v179_v23 }
  0xbb   :  { %837 = vmatpush.bf16.msra.mxu1 %v2181_v13 }
  0xc1   :  { %v181_v25 = vpop.f32.mrf.mxu0 }
  0xc2   :  { %v182_v26 = vadd.f32 %v1785_v18, %v181_v25 }
  0xc4   :  { %v195_v27 = vpack.c.bf16 %v182_v26, %v180_v24 }
  0xc6   :  { %1631 = vmatmul.msk.bf16.gmra.mxu1 %vm218_vm0, %v195_v27 }
  0xc9   :  { %v184_v28 = vpop.f32.mrf.mxu0 }
  0xca   :  { %v185_v29 = vadd.f32 %v1785_v18, %v184_v28 }
  0xd1   :  { %v186_v30 = vpop.f32.mrf.mxu0 }
  0xd2   :  { %v187_v31 = vadd.f32 %v1785_v18, %v186_v30 }
  0xd4   :  { %v196_v32 = vpack.c.bf16 %v187_v31, %v185_v29 }
  0xd6   :  { %1632 = vmatmul.msk.bf16.gmra.mxu1 %vm218_vm0, %v196_v32 }
  0xd9   :  { %v189_v33 = vpop.f32.mrf.mxu0 }
  0xda   :  { %v190_v34 = vadd.f32 %v1785_v18, %v189_v33 }
  0xe1   :  { %v191_v35 = vpop.f32.mrf.mxu0 }
  0xe2   :  { %v192_v36 = vadd.f32 %v1785_v18, %v191_v35  ;;  %v2193_v18 = vld [vmem:[#allocation6 + $0x18] sm:$0xff] }
  0xe3   :  { %444 = vmatpush.bf16.msrb.mxu3 %v2193_v18  ;;  %1128 = vmatpush.bf16.msrb.mxu0 %v2193_v18 }
  0xe4   :  { %v197_v37 = vpack.c.bf16 %v192_v36, %v190_v34 }
  0xe6   :  { %1633 = vmatmul.msk.bf16.gmra.mxu1 %vm218_vm0, %v197_v37 }
  0xe7   :  { %445 = vmatpush.bf16.msrb.mxu3 %v2196_v19  ;;  %1129 = vmatpush.bf16.msrb.mxu0 %v2196_v19 }
  0xe9   :  { %v300_v38 = vpop.f32.mrf.mxu0 }
  0xf1   :  { %v302_v39 = vpop.f32.mrf.mxu0 }
 0x133   :  { %v240_v41 = vpop.f32.mrf.mxu1 }
 0x134   :  { %v241_v42 = vadd.f32 %v2148_v40, %v240_v41 }
 0x136   :  { %v301_v43 = vadd.f32 %v300_v38, %v241_v42 }
 0x138   :  { %v1647_v44 = vmul.f32 -1.442695, %v301_v43 }
 0x13a   :  { %1789 = vpow2.f32 %v1647_v44 }
 0x13b   :  { %v2151_v45 = vpop.f32.mrf.mxu1 }
 0x13c   :  { %v243_v21 = vadd.f32 %v2148_v40, %v2151_v45 }
 0x140   :  { %v1790_v46 = vpop.eup %1789 }
 0x141   :  { %v307_v47 = vadd.f32 1.0, %v1790_v46 }
 0x143   :  { %1791 = vrcp.f32 %v307_v47  ;;  %v2153_v48 = vpop.f32.mrf.mxu1  ;;  %v319_v53 = vand.u32 2147483648, %v307_v47  ;;  %v317_v55 = vand.u32 2147483647, %v307_v47  ;;  %vm313_vm2 = vweird.f32 %v307_v47 }
 0x145   :  { %v320_v57 = vor.u32 1.1754944e-38, %v319_v53  ;;  %vm318_vm4 = vcmp.eq.f32.partialorder %v317_v55, 8.507059e+37 }
 0x149   :  { %v1792_v49 = vpop.eup %1791 }
 0x14a   :  { %v309_v50 = vmul.f32 %v1792_v49, %v307_v47  ;;  %vm314_vm1 = vweird.f32 %v1792_v49 }
 0x14b   :  { %v2155_v51 = vpop.f32.mrf.mxu1  ;;  %vm315_vm3 = vmor %vm313_vm2, %vm314_vm1 }
 0x14c   :  { %v310_v52 = vsub.f32 1.0, %v309_v50 }
 0x14e   :  { %v311_v54 = vmul.f32 %v1792_v49, %v310_v52 }
 0x150   :  { %v312_v56 = vadd.f32 %v1792_v49, %v311_v54 }
 0x152   :  { %v316_v58 = vsel %vm315_vm3, %v1792_v49, %v312_v56 }
 0x153   :  { %v321_v59 = vsel %vm318_vm4, %v320_v57, %v316_v58  ;;  %v250_v60 = vpop.f32.mrf.mxu1 }
 0x154   :  { %v323_v61 = vmul.f32 2.0, %v321_v59  ;;  %v2158_v62 = vadd.f32 %v2148_v40, %v250_v60  ;;  %v325_v7 = vmul.f32 0.0, %v321_v59 }
 0x156   :  { %v1648_v63 = vadd.f32 -1.0, %v323_v61 }
 0x158   :  { %327 = vrot.lane.b32.xlu0 %v1648_v63, %s2017_s23 }
 0x15b   :  { %v252_v0 = vpop.f32.mrf.mxu1 }
 0x15c   :  { %v2162_v1 = vadd.f32 %v2148_v40, %v252_v0 }
 0x163   :  { %v255_v2 = vpop.f32.mrf.mxu1 }
 0x164   :  { %v2165_v3 = vadd.f32 %v2148_v40, %v255_v2 }
 0x1ca   :  { %v328_v4 = vpop.permute.xlu0 %327 }
 0x1cb   :  { %v330_v6 = vmul.f32 %v328_v4, %v321_v59 }
 0x1cd   :  { %332 = vrot.lane.b32.xlu0 %v330_v6, %s2020_s30 }
 0x23f   :  { %v333_v8 = vpop.permute.xlu0 %332 }
 0x240   :  { %v2168_v9 = vadd.f32 %v333_v8, %v325_v7 }
 0x242   :  { %1793 = vtanh.f32 %v2168_v9 }
 0x248   :  { %v1794_v10 = vpop.eup %1793 }
 0x249   :  { %338 = vrot.lane.b32.xlu1 %v1794_v10, %s2017_s23 }
 0x2bb   :  { %v339_v14 = vpop.permute.xlu1 %338 }
 0x2bc   :  { %v341_v16 = vmul.f32 %v339_v14, %v321_v59 }
 0x2be   :  { %v342_v17 = vpack.c.bf16 %v341_v16, %v341_v16 }
 0x2c0   :  { %344 = vrot.lane.b32.xlu1 %v342_v17, %s2020_s30 }
 0x332   :  { %v345_v20 = vpop.permute.xlu1 %344 }
 0x333   :  { %1649 = vmatmul.msk.bf16.vlgmr.msra.gmra.mxu3 %vm218_vm0, %v345_v20  ;;  %1660 = vmatmul.msk.bf16.vlgmr.msra.gmra.mxu2 %vm218_vm0, %v345_v20 }
 0x334   :  { %564 = vmatpush.bf16.msra.mxu3 %v2175_v12  ;;  %584 = vmatpush.bf16.msra.mxu2 %v2193_v18 }
 0x338   :  { %565 = vmatpush.bf16.msra.mxu3 %v2181_v13  ;;  %585 = vmatpush.bf16.msra.mxu2 %v2196_v19 }
 0x343   :  { %446 = vmatmul.bf16.vlgmr.msrb.gmra.mxu3 %v2019_v15  ;;  %v2215_v15 = vld [vmem:[%s2486_s5 + $0x1] ss:$0 sm:$0xff] }
 0x344   :  { %648 = vmatpush.bf16.msrb.mxu3 %v2105_v5 }
 0x348   :  { %649 = vmatpush.bf16.msrb.mxu3 %v2124_v11 }
 0x3b6   :  { %v358_v22 = vpop.f32.mrf.mxu3  ;;  %v422_v23 = vpop.f32.mrf.mxu2 }
 0x3b7   :  { %v359_v24 = vadd.f32 %v358_v22, %v243_v21 }
 0x3b9   :  { %v1650_v25 = vmul.f32 -1.442695, %v359_v24 }
 0x3bb   :  { %1795 = vpow2.f32 %v1650_v25 }
 0x3be   :  { %v360_v26 = vpop.f32.mrf.mxu3  ;;  %v424_v27 = vpop.f32.mrf.mxu2 }
 0x3c1   :  { %v1796_v28 = vpop.eup %1795 }
 0x3c2   :  { %v365_v29 = vadd.f32 1.0, %v1796_v28 }
 0x3c4   :  { %1797 = vrcp.f32 %v365_v29  ;;  %v377_v38 = vand.u32 2147483648, %v365_v29  ;;  %v375_v41 = vand.u32 2147483647, %v365_v29  ;;  %vm371_vm6 = vweird.f32 %v365_v29 }
 0x3c6   :  { %v447_v30 = vpop.f32.mrf.mxu3  ;;  %v378_v43 = vor.u32 1.1754944e-38, %v377_v38  ;;  %vm376_vm8 = vcmp.eq.f32.partialorder %v375_v41, 8.507059e+37 }
 0x3c7   :  { %v448_v31 = vadd.f32 %v447_v30, %v422_v23 }
 0x3c9   :  { %v454_v32 = vadd.f32 %v2215_v15, %v448_v31 }
 0x3ca   :  { %v1798_v33 = vpop.eup %1797 }
 0x3cb   :  { %v1669_v34 = vmul.f32 -1.442695, %v454_v32  ;;  %v367_v35 = vmul.f32 %v1798_v33, %v365_v29  ;;  %vm372_vm5 = vweird.f32 %v1798_v33  ;;  %v246_v32 = vadd.f32 %v2148_v40, %v2153_v48 }
 0x3cc   :  { %vm373_vm7 = vmor %vm371_vm6, %vm372_vm5 }
 0x3cd   :  { %1799 = vpow2.f32 %v1669_v34  ;;  %v368_v36 = vsub.f32 1.0, %v367_v35 }
 0x3ce   :  { %v449_v37 = vpop.f32.mrf.mxu3 }
 0x3cf   :  { %v369_v39 = vmul.f32 %v1798_v33, %v368_v36 }
 0x3d1   :  { %v370_v42 = vadd.f32 %v1798_v33, %v369_v39 }
 0x3d3   :  { %v1800_v44 = vpop.eup %1799  ;;  %v374_v45 = vsel %vm373_vm7, %v1798_v33, %v370_v42 }
 0x3d4   :  { %v458_v46 = vadd.f32 1.0, %v1800_v44  ;;  %v379_v47 = vsel %vm376_vm8, %v378_v43, %v374_v45 }
 0x3d5   :  { %v381_v49 = vmul.f32 2.0, %v379_v47  ;;  %v383_v8 = vmul.f32 %v379_v47, %v2168_v9 }
 0x3d6   :  { %1801 = vrcp.f32 %v458_v46  ;;  %v470_v55 = vand.u32 2147483648, %v458_v46  ;;  %v468_v57 = vand.u32 2147483647, %v458_v46  ;;  %vm464_vm10 = vweird.f32 %v458_v46 }
 0x3d7   :  { %v1651_v50 = vadd.f32 -1.0, %v381_v49 }
 0x3d8   :  { %v471_v59 = vor.u32 1.1754944e-38, %v470_v55  ;;  %vm469_vm12 = vcmp.eq.f32.partialorder %v468_v57, 8.507059e+37 }
 0x3d9   :  { %385 = vrot.lane.b32.xlu2 %v1651_v50, %s2017_s23 }
 0x3dc   :  { %v1802_v52 = vpop.eup %1801 }
 0x3dd   :  { %v460_v53 = vmul.f32 %v1802_v52, %v458_v46  ;;  %vm465_vm9 = vweird.f32 %v1802_v52 }
 0x3de   :  { %vm466_vm11 = vmor %vm464_vm10, %vm465_vm9 }
 0x3df   :  { %v461_v54 = vsub.f32 1.0, %v460_v53 }
 0x3e1   :  { %v462_v56 = vmul.f32 %v1802_v52, %v461_v54 }
 0x3e3   :  { %v463_v58 = vadd.f32 %v1802_v52, %v462_v56 }
 0x3e5   :  { %v467_v60 = vsel %vm466_vm11, %v1802_v52, %v463_v58 }
 0x3e6   :  { %v472_v61 = vsel %vm469_vm12, %v471_v59, %v467_v60 }
 0x3e7   :  { %v474_v63 = vmul.f32 2.0, %v472_v61  ;;  %v476_v17 = vmul.f32 0.0, %v472_v61 }
 0x3e9   :  { %v1670_v0 = vadd.f32 -1.0, %v474_v63 }
 0x3eb   :  { %478 = vrot.lane.b32.xlu2 %v1670_v0, %s2017_s23 }
 0x433   :  { %v386_v2 = vpop.permute.xlu2 %385 }
 0x434   :  { %v388_v4 = vmul.f32 %v386_v2, %v379_v47 }
 0x436   :  { %390 = vrot.lane.b32.xlu0 %v388_v4, %s2020_s30 }
 0x445   :  { %v479_v6 = vpop.permute.xlu2 %478 }
 0x446   :  { %v481_v7 = vmul.f32 %v479_v6, %v472_v61 }
 0x448   :  { %483 = vrot.lane.b32.xlu1 %v481_v7, %s2020_s30 }
 0x4a8   :  { %v391_v10 = vpop.permute.xlu0 %390 }
 0x4a9   :  { %v2223_v14 = vadd.f32 %v391_v10, %v383_v8 }
 0x4ab   :  { %1803 = vtanh.f32 %v2223_v14 }
 0x4b1   :  { %v1804_v16 = vpop.eup %1803 }
 0x4b2   :  { %396 = vrot.lane.b32.xlu2 %v1804_v16, %s2017_s23 }
 0x4ba   :  { %v484_v20 = vpop.permute.xlu1 %483 }
 0x4bb   :  { %v2227_v21 = vadd.f32 %v484_v20, %v476_v17 }
 0x4bd   :  { %1805 = vtanh.f32 %v2227_v21 }
 0x4c3   :  { %v1806_v22 = vpop.eup %1805 }
 0x4c4   :  { %489 = vrot.lane.b32.xlu0 %v1806_v22, %s2017_s23 }
 0x50c   :  { %v397_v23 = vpop.permute.xlu2 %396 }
 0x50d   :  { %v399_v24 = vmul.f32 %v397_v23, %v379_v47 }
 0x50f   :  { %v400_v9 = vpack.c.bf16 %v399_v24, %v399_v24 }
 0x511   :  { %501 = vrot.lane.b32.xlu1 %v400_v9, %s2020_s30 }
 0x536   :  { %v490_v25 = vpop.permute.xlu0 %489 }
 0x537   :  { %v492_v26 = vmul.f32 %v490_v25, %v472_v61 }
 0x539   :  { %v2232_v27 = vpack.c.bf16 %v492_v26, %v492_v26 }
 0x53b   :  { %v571_v28 = vunpack.c.l.b16 %v2232_v27 }
 0x53d   :  { %v572_v29 = vpack.c.b16 %v571_v28, %v571_v28 }
 0x53f   :  { %573 = vrot.lane.b32.xlu2 %v572_v29, %s2020_s30 }
 0x583   :  { %v502_v30 = vpop.permute.xlu1 %501 }
 0x584   :  { %1671 = vmatmul.msk.bf16.vlgmr.msrb.gmra.mxu2 %vm218_vm0, %v502_v30  ;;  %1674 = vmatmul.msk.bf16.vlgmr.msra.gmra.mxu3 %vm218_vm0, %v502_v30 }
 0x585   :  { %720 = vmatpush.bf16.msrb.mxu2 %v2193_v18  ;;  %784 = vmatpush.bf16.msra.mxu3 %v2105_v5 }
 0x589   :  { %721 = vmatpush.bf16.msrb.mxu2 %v2196_v19  ;;  %785 = vmatpush.bf16.msra.mxu3 %v2124_v11 }
 0x599   :  { %v574_v31 = vpop.permute.xlu2 %573 }
 0x59a   :  { %1675 = vmatmul.msk.bf16.vlgmr.msra.gmra.mxu2 %vm218_vm0, %v574_v31 }
 0x59b   :  { %856 = vmatpush.bf16.msra.mxu2 %v2193_v18 }
 0x59f   :  { %857 = vmatpush.bf16.msra.mxu2 %v2196_v19 }
 0x607   :  { %v515_v33 = vpop.f32.mrf.mxu2  ;;  %v567_v34 = vpop.f32.mrf.mxu3 }
 0x608   :  { %v516_v35 = vadd.f32 %v515_v33, %v246_v32 }
 0x60a   :  { %v1672_v36 = vmul.f32 -1.442695, %v516_v35 }
 0x60c   :  { %1807 = vpow2.f32 %v1672_v36 }
 0x60f   :  { %v517_v37 = vpop.f32.mrf.mxu2  ;;  %v569_v38 = vpop.f32.mrf.mxu3 }
 0x612   :  { %v1808_v39 = vpop.eup %1807 }
 0x613   :  { %v522_v41 = vadd.f32 1.0, %v1808_v39 }
 0x615   :  { %1809 = vrcp.f32 %v522_v41  ;;  %v534_v47 = vand.u32 2147483648, %v522_v41  ;;  %v532_v48 = vand.u32 2147483647, %v522_v41  ;;  %vm528_vm14 = vweird.f32 %v522_v41 }
 0x617   :  { %v535_v54 = vor.u32 1.1754944e-38, %v534_v47  ;;  %vm533_vm1 = vcmp.eq.f32.partialorder %v532_v48, 8.507059e+37 }
 0x61b   :  { %v1810_v42 = vpop.eup %1809 }
 0x61c   :  { %v524_v43 = vmul.f32 %v1810_v42, %v522_v41  ;;  %vm529_vm13 = vweird.f32 %v1810_v42 }
 0x61d   :  { %v587_v44 = vpop.f32.mrf.mxu2  ;;  %vm530_vm15 = vmor %vm528_vm14, %vm529_vm13 }
 0x61e   :  { %v525_v45 = vsub.f32 1.0, %v524_v43  ;;  %v588_v46 = vadd.f32 %v587_v44, %v567_v34  ;;  %v2276_v44 = vpop.f32.mrf.mxu1 }
 0x620   :  { %v591_v49 = vadd.f32 %v2215_v15, %v588_v46  ;;  %v526_v50 = vmul.f32 %v1810_v42, %v525_v45  ;;  %v248_v46 = vadd.f32 %v2148_v40, %v2155_v51 }
 0x622   :  { %v1676_v52 = vmul.f32 -1.442695, %v591_v49  ;;  %v527_v53 = vadd.f32 %v1810_v42, %v526_v50 }
 0x624   :  { %1811 = vpow2.f32 %v1676_v52  ;;  %v531_v55 = vsel %vm530_vm15, %v1810_v42, %v527_v53 }
 0x625   :  { %v589_v56 = vpop.f32.mrf.mxu2  ;;  %v536_v57 = vsel %vm533_vm1, %v535_v54, %v531_v55 }
 0x626   :  { %v538_v58 = vmul.f32 2.0, %v536_v57  ;;  %v540_v28 = vmul.f32 %v536_v57, %v2223_v14 }
 0x628   :  { %v1673_v59 = vadd.f32 -1.0, %v538_v58 }
 0x62a   :  { %v1812_v60 = vpop.eup %1811  ;;  %542 = vrot.lane.b32.xlu1 %v1673_v59, %s2017_s23 }
 0x62b   :  { %v595_v61 = vadd.f32 1.0, %v1812_v60 }
 0x62d   :  { %1813 = vrcp.f32 %v595_v61  ;;  %v607_v4 = vand.u32 2147483648, %v595_v61  ;;  %v605_v7 = vand.u32 2147483647, %v595_v61  ;;  %vm601_vm3 = vweird.f32 %v595_v61 }
 0x62f   :  { %v608_v10 = vor.u32 1.1754944e-38, %v607_v4  ;;  %vm606_vm5 = vcmp.eq.f32.partialorder %v605_v7, 8.507059e+37 }
 0x633   :  { %v1814_v63 = vpop.eup %1813 }
 0x634   :  { %v597_v0 = vmul.f32 %v1814_v63, %v595_v61  ;;  %vm602_vm2 = vweird.f32 %v1814_v63 }
 0x635   :  { %vm603_vm4 = vmor %vm601_vm3, %vm602_vm2 }
 0x636   :  { %v598_v2 = vsub.f32 1.0, %v597_v0 }
 0x638   :  { %v599_v6 = vmul.f32 %v1814_v63, %v598_v2 }
 0x63a   :  { %v600_v8 = vadd.f32 %v1814_v63, %v599_v6 }
 0x63c   :  { %v604_v16 = vsel %vm603_vm4, %v1814_v63, %v600_v8 }
 0x63d   :  { %v609_v17 = vsel %vm606_vm5, %v608_v10, %v604_v16 }
 0x63e   :  { %v611_v20 = vmul.f32 2.0, %v609_v17  ;;  %v613_v26 = vmul.f32 %v609_v17, %v2227_v21 }
 0x640   :  { %v1677_v22 = vadd.f32 -1.0, %v611_v20 }
 0x642   :  { %615 = vrot.lane.b32.xlu0 %v1677_v22, %s2017_s23 }
 0x69c   :  { %v543_v23 = vpop.permute.xlu1 %542 }
 0x69d   :  { %v545_v24 = vmul.f32 %v543_v23, %v536_v57 }
 0x69f   :  { %547 = vrot.lane.b32.xlu0 %v545_v24, %s2020_s30 }
 0x6b4   :  { %v616_v9 = vpop.permute.xlu0 %615 }
 0x6b5   :  { %v618_v25 = vmul.f32 %v616_v9, %v609_v17 }
 0x6b7   :  { %620 = vrot.lane.b32.xlu2 %v618_v25, %s2020_s30 }
 0x711   :  { %v621_v29 = vpop.permute.xlu2 %620  ;;  %v548_v30 = vpop.permute.xlu0 %547 }
 0x712   :  { %v2254_v31 = vadd.f32 %v621_v29, %v613_v26  ;;  %v2256_v32 = vadd.f32 %v548_v30, %v540_v28 }
 0x714   :  { %1815 = vtanh.f32 %v2254_v31 }
 0x715   :  { %1817 = vtanh.f32 %v2256_v32 }
 0x71a   :  { %v1816_v33 = vpop.eup %1815 }
 0x71b   :  { %v1818_v34 = vpop.eup %1817  ;;  %626 = vrot.lane.b32.xlu1 %v1816_v33, %s2017_s23 }
 0x71c   :  { %553 = vrot.lane.b32.xlu2 %v1818_v34, %s2017_s23 }
 0x776   :  { %v554_v35 = vpop.permute.xlu2 %553 }
 0x777   :  { %v556_v21 = vmul.f32 %v554_v35, %v536_v57 }
 0x779   :  { %v557_v36 = vpack.c.bf16 %v556_v21, %v556_v21 }
 0x77b   :  { %637 = vrot.lane.b32.xlu1 %v557_v36, %s2020_s30 }
 0x78d   :  { %v627_v14 = vpop.permute.xlu1 %626 }
 0x78e   :  { %v629_v37 = vmul.f32 %v627_v14, %v609_v17 }
 0x790   :  { %v2263_v38 = vpack.c.bf16 %v629_v37, %v629_v37 }
 0x792   :  { %v707_v39 = vunpack.c.l.b16 %v2263_v38 }
 0x794   :  { %v708_v41 = vpack.c.b16 %v707_v39, %v707_v39 }
 0x796   :  { %709 = vrot.lane.b32.xlu0 %v708_v41, %s2020_s30 }
 0x7ed   :  { %v638_v42 = vpop.permute.xlu1 %637 }
 0x7ee   :  { %1678 = vmatmul.msk.bf16.vlgmr.msrb.gmra.mxu3 %vm218_vm0, %v638_v42  ;;  %1681 = vmatmul.msk.bf16.vlgmr.msrb.gmra.mxu1 %vm218_vm0, %v638_v42 }
 0x7ef   :  { %920 = vmatpush.bf16.msrb.mxu3 %v2105_v5  ;;  %992 = vmatpush.bf16.msrb.mxu1 %v2193_v18 }
 0x7f3   :  { %921 = vmatpush.bf16.msrb.mxu3 %v2124_v11  ;;  %993 = vmatpush.bf16.msrb.mxu1 %v2196_v19 }
 0x808   :  { %v710_v43 = vpop.permute.xlu0 %709 }
 0x809   :  { %1682 = vmatmul.msk.bf16.vlgmr.msrb.gmra.mxu2 %vm218_vm0, %v710_v43 }
 0x80a   :  { %1056 = vmatpush.bf16.msrb.mxu2 %v2105_v5 }
 0x80e   :  { %1057 = vmatpush.bf16.msrb.mxu2 %v2124_v11 }
 0x86b   :  { %v703_v45 = vpop.f32.mrf.mxu1 }
 0x871   :  { %v651_v47 = vpop.f32.mrf.mxu3 }
 0x872   :  { %v652_v49 = vadd.f32 %v651_v47, %v248_v46 }
 0x873   :  { %v705_v50 = vpop.f32.mrf.mxu1 }
 0x874   :  { %v1679_v48 = vmul.f32 -1.442695, %v652_v49 }
 0x876   :  { %1819 = vpow2.f32 %v1679_v48 }
 0x879   :  { %v653_v52 = vpop.f32.mrf.mxu3 }
 0x87c   :  { %v1820_v53 = vpop.eup %1819 }
 0x87d   :  { %v658_v54 = vadd.f32 1.0, %v1820_v53 }
 0x87f   :  { %1821 = vrcp.f32 %v658_v54  ;;  %v670_v58 = vand.u32 2147483648, %v658_v54  ;;  %v668_v60 = vand.u32 2147483647, %v658_v54  ;;  %vm664_vm7 = vweird.f32 %v658_v54 }
 0x881   :  { %v671_v51 = vor.u32 1.1754944e-38, %v670_v58  ;;  %vm669_vm9 = vcmp.eq.f32.partialorder %v668_v60, 8.507059e+37 }
 0x885   :  { %v1822_v55 = vpop.eup %1821 }
 0x886   :  { %v660_v56 = vmul.f32 %v1822_v55, %v658_v54  ;;  %vm665_vm6 = vweird.f32 %v1822_v55 }
 0x887   :  { %vm666_vm8 = vmor %vm664_vm7, %vm665_vm6 }
 0x888   :  { %v661_v57 = vsub.f32 1.0, %v660_v56 }
 0x88a   :  { %v662_v59 = vmul.f32 %v1822_v55, %v661_v57 }
 0x88c   :  { %v723_v61 = vpop.f32.mrf.mxu2  ;;  %v663_v63 = vadd.f32 %v1822_v55, %v662_v59 }
 0x88d   :  { %v724_v40 = vadd.f32 %v723_v61, %v703_v45 }
 0x88e   :  { %v667_v0 = vsel %vm666_vm8, %v1822_v55, %v663_v63 }
 0x88f   :  { %v727_v2 = vadd.f32 %v2215_v15, %v724_v40  ;;  %v672_v4 = vsel %vm669_vm9, %v671_v51, %v667_v0 }
 0x890   :  { %v674_v6 = vmul.f32 2.0, %v672_v4  ;;  %v676_v37 = vmul.f32 %v672_v4, %v2256_v32 }
 0x891   :  { %v1683_v7 = vmul.f32 -1.442695, %v727_v2 }
 0x892   :  { %v1680_v8 = vadd.f32 -1.0, %v674_v6 }
 0x893   :  { %1823 = vpow2.f32 %v1683_v7 }
 0x894   :  { %678 = vrot.lane.b32.xlu0 %v1680_v8, %s2017_s23  ;;  %v725_v10 = vpop.f32.mrf.mxu2 }
 0x899   :  { %v1824_v16 = vpop.eup %1823 }
 0x89a   :  { %v731_v17 = vadd.f32 1.0, %v1824_v16 }
 0x89c   :  { %1825 = vrcp.f32 %v731_v17  ;;  %v743_v24 = vand.u32 2147483648, %v731_v17  ;;  %v741_v25 = vand.u32 2147483647, %v731_v17  ;;  %vm737_vm11 = vweird.f32 %v731_v17 }
 0x89e   :  { %v744_v28 = vor.u32 1.1754944e-38, %v743_v24  ;;  %vm742_vm13 = vcmp.eq.f32.partialorder %v741_v25, 8.507059e+37 }
 0x8a2   :  { %v1826_v20 = vpop.eup %1825 }
 0x8a3   :  { %v733_v22 = vmul.f32 %v1826_v20, %v731_v17  ;;  %vm738_vm10 = vweird.f32 %v1826_v20 }
 0x8a4   :  { %vm739_vm12 = vmor %vm737_vm11, %vm738_vm10 }
 0x8a5   :  { %v734_v23 = vsub.f32 1.0, %v733_v22 }
 0x8a7   :  { %v735_v9 = vmul.f32 %v1826_v20, %v734_v23 }
 0x8a9   :  { %v736_v26 = vadd.f32 %v1826_v20, %v735_v9 }
 0x8ab   :  { %v740_v29 = vsel %vm739_vm12, %v1826_v20, %v736_v26 }
 0x8ac   :  { %v745_v30 = vsel %vm742_vm13, %v744_v28, %v740_v29 }
 0x8ad   :  { %v747_v33 = vmul.f32 2.0, %v745_v30  ;;  %v749_v43 = vmul.f32 %v745_v30, %v2254_v31 }
 0x8af   :  { %v1684_v34 = vadd.f32 -1.0, %v747_v33 }
 0x8b1   :  { %751 = vrot.lane.b32.xlu2 %v1684_v34, %s2017_s23 }
 0x906   :  { %v679_v35 = vpop.permute.xlu0 %678 }
 0x907   :  { %v681_v21 = vmul.f32 %v679_v35, %v672_v4 }
 0x909   :  { %683 = vrot.lane.b32.xlu2 %v681_v21, %s2020_s30 }
 0x90b   :  { %v752_v36 = vpop.permute.xlu2 %751 }
 0x90c   :  { %v754_v14 = vmul.f32 %v752_v36, %v745_v30 }
 0x90e   :  { %756 = vrot.lane.b32.xlu1 %v754_v14, %s2020_s30 }
 0x963   :  { %v684_v39 = vpop.permute.xlu2 %683 }
 0x964   :  { %v2286_v41 = vadd.f32 %v684_v39, %v676_v37 }
 0x966   :  { %1827 = vtanh.f32 %v2286_v41 }
 0x96c   :  { %v1828_v42 = vpop.eup %1827 }
 0x96d   :  { %689 = vrot.lane.b32.xlu1 %v1828_v42, %s2017_s23 }
 0x980   :  { %v757_v45 = vpop.permute.xlu1 %756 }
 0x981   :  { %v2291_v46 = vadd.f32 %v757_v45, %v749_v43 }
 0x983   :  { %1829 = vtanh.f32 %v2291_v46 }
 0x989   :  { %v1830_v47 = vpop.eup %1829 }
 0x98a   :  { %762 = vrot.lane.b32.xlu0 %v1830_v47, %s2017_s23 }
 0x9df   :  { %v690_v49 = vpop.permute.xlu1 %689 }
 0x9e0   :  { %v692_v32 = vmul.f32 %v690_v49, %v672_v4 }
 0x9e2   :  { %v693_v50 = vpack.c.bf16 %v692_v32, %v692_v32 }
 0x9e4   :  { %773 = vrot.lane.b32.xlu2 %v693_v50, %s2020_s30 }
 0x9fc   :  { %v763_v48 = vpop.permute.xlu0 %762 }
 0x9fd   :  { %v765_v52 = vmul.f32 %v763_v48, %v745_v30 }
 0x9ff   :  { %v2296_v53 = vpack.c.bf16 %v765_v52, %v765_v52 }
 0xa01   :  { %v843_v54 = vunpack.c.l.b16 %v2296_v53 }
 0xa03   :  { %v844_v31 = vpack.c.b16 %v843_v54, %v843_v54 }
 0xa05   :  { %845 = vrot.lane.b32.xlu0 %v844_v31, %s2020_s30 }
 0xa3e   :  { %v774_v55 = vpop.permute.xlu2 %773 }
 0xa3f   :  { %1685 = vmatmul.msk.bf16.vlgmr.msra.gmra.mxu3 %vm218_vm0, %v774_v55  ;;  %1688 = vmatmul.msk.bf16.vlgmr.msra.gmra.mxu1 %vm218_vm0, %v774_v55 }
 0xa40   :  { %1108 = vmatpush.bf16.msra.mxu3 %v2175_v12  ;;  %1192 = vmatpush.bf16.msra.mxu1 %v2105_v5 }
 0xa44   :  { %1109 = vmatpush.bf16.msra.mxu3 %v2181_v13  ;;  %1193 = vmatpush.bf16.msra.mxu1 %v2124_v11 }
 0xa77   :  { %v846_v56 = vpop.permute.xlu0 %845 }
 0xa78   :  { %1689 = vmatmul.msk.bf16.vlgmr.msra.gmra.mxu2 %vm218_vm0, %v846_v56 }
 0xa79   :  { %1254 = vmatpush.bf16.msra.mxu2 %v2175_v12 }
 0xa7d   :  { %1255 = vmatpush.bf16.msra.mxu2 %v2181_v13 }
 0xabc   :  { %v839_v57 = vpop.f32.mrf.mxu1 }
 0xac2   :  { %v787_v58 = vpop.f32.mrf.mxu3 }
 0xac3   :  { %v788_v59 = vadd.f32 %v787_v58, %v2158_v62 }
 0xac4   :  { %v841_v60 = vpop.f32.mrf.mxu1 }
 0xac5   :  { %v1686_v61 = vmul.f32 -1.442695, %v788_v59 }
 0xac7   :  { %1831 = vpow2.f32 %v1686_v61 }
 0xaca   :  { %v789_v63 = vpop.f32.mrf.mxu3 }
 0xacd   :  { %v1832_v5 = vpop.eup %1831 }
 0xace   :  { %v794_v40 = vadd.f32 1.0, %v1832_v5 }
 0xad0   :  { %1833 = vrcp.f32 %v794_v40  ;;  %v806_v2 = vand.u32 2147483648, %v794_v40  ;;  %v804_v6 = vand.u32 2147483647, %v794_v40  ;;  %vm800_vm15 = vweird.f32 %v794_v40 }
 0xad2   :  { %v807_v8 = vor.u32 1.1754944e-38, %v806_v2  ;;  %vm805_vm2 = vcmp.eq.f32.partialorder %v804_v6, 8.507059e+37 }
 0xad6   :  { %v1834_v51 = vpop.eup %1833 }
 0xad7   :  { %v796_v11 = vmul.f32 %v1834_v51, %v794_v40  ;;  %vm801_vm14 = vweird.f32 %v1834_v51 }
 0xad8   :  { %vm802_vm1 = vmor %vm800_vm15, %vm801_vm14 }
 0xad9   :  { %v797_v0 = vsub.f32 1.0, %v796_v11 }
 0xadb   :  { %v798_v4 = vmul.f32 %v1834_v51, %v797_v0 }
 0xadd   :  { %v799_v7 = vadd.f32 %v1834_v51, %v798_v4 }
 0xadf   :  { %v803_v10 = vsel %vm802_vm1, %v1834_v51, %v799_v7 }
 0xae0   :  { %v808_v62 = vsel %vm805_vm2, %v807_v8, %v803_v10 }
 0xae1   :  { %v810_v16 = vmul.f32 2.0, %v808_v62  ;;  %v812_v32 = vmul.f32 %v808_v62, %v2286_v41 }
 0xae3   :  { %v1687_v17 = vadd.f32 -1.0, %v810_v16 }
 0xae5   :  { %814 = vrot.lane.b32.xlu1 %v1687_v17, %s2017_s23 }
 0xafb   :  { %v859_v20 = vpop.f32.mrf.mxu2 }
 0xafc   :  { %v860_v22 = vadd.f32 %v859_v20, %v839_v57 }
 0xafe   :  { %v863_v23 = vadd.f32 %v2215_v15, %v860_v22 }
 0xb00   :  { %v1690_v24 = vmul.f32 -1.442695, %v863_v23 }
 0xb02   :  { %1835 = vpow2.f32 %v1690_v24 }
 0xb03   :  { %v861_v9 = vpop.f32.mrf.mxu2 }
 0xb08   :  { %v1836_v25 = vpop.eup %1835 }
 0xb09   :  { %v867_v26 = vadd.f32 1.0, %v1836_v25 }
 0xb0b   :  { %1837 = vrcp.f32 %v867_v26  ;;  %v879_v33 = vand.u32 2147483648, %v867_v26  ;;  %v877_v35 = vand.u32 2147483647, %v867_v26  ;;  %vm873_vm4 = vweird.f32 %v867_v26 }
 0xb0d   :  { %v880_v36 = vor.u32 1.1754944e-38, %v879_v33  ;;  %vm878_vm6 = vcmp.eq.f32.partialorder %v877_v35, 8.507059e+37 }
 0xb11   :  { %v1838_v28 = vpop.eup %1837 }
 0xb12   :  { %v869_v29 = vmul.f32 %v1838_v28, %v867_v26  ;;  %vm874_vm3 = vweird.f32 %v1838_v28 }
 0xb13   :  { %vm875_vm5 = vmor %vm873_vm4, %vm874_vm3 }
 0xb14   :  { %v870_v30 = vsub.f32 1.0, %v869_v29 }
 0xb16   :  { %v871_v34 = vmul.f32 %v1838_v28, %v870_v30 }
 0xb18   :  { %v872_v21 = vadd.f32 %v1838_v28, %v871_v34 }
 0xb1a   :  { %v876_v14 = vsel %vm875_vm5, %v1838_v28, %v872_v21 }
 0xb1b   :  { %v881_v37 = vsel %vm878_vm6, %v880_v36, %v876_v14 }
 0xb1c   :  { %v883_v39 = vmul.f32 2.0, %v881_v37  ;;  %v885_v54 = vmul.f32 %v881_v37, %v2291_v46 }
 0xb1e   :  { %v1691_v42 = vadd.f32 -1.0, %v883_v39 }
 0xb20   :  { %887 = vrot.lane.b32.xlu2 %v1691_v42, %s2017_s23 }
 0xb57   :  { %v815_v43 = vpop.permute.xlu1 %814 }
 0xb58   :  { %v817_v45 = vmul.f32 %v815_v43, %v808_v62 }
 0xb5a   :  { %819 = vrot.lane.b32.xlu0 %v817_v45, %s2020_s30 }
 0xb7a   :  { %v888_v47 = vpop.permute.xlu2 %887 }
 0xb7b   :  { %v890_v49 = vmul.f32 %v888_v47, %v881_v37 }
 0xb7d   :  { %892 = vrot.lane.b32.xlu1 %v890_v49, %s2020_s30 }
 0xbcc   :  { %v820_v50 = vpop.permute.xlu0 %819 }
 0xbcd   :  { %v2316_v48 = vadd.f32 %v820_v50, %v812_v32 }
 0xbcf   :  { %1839 = vtanh.f32 %v2316_v48 }
 0xbd5   :  { %v1840_v52 = vpop.eup %1839 }
 0xbd6   :  { %825 = vrot.lane.b32.xlu2 %v1840_v52, %s2017_s23 }
 0xbef   :  { %v893_v31 = vpop.permute.xlu1 %892 }
 0xbf0   :  { %v2321_v55 = vadd.f32 %v893_v31, %v885_v54 }
 0xbf2   :  { %1841 = vtanh.f32 %v2321_v55 }
 0xbf8   :  { %v1842_v56 = vpop.eup %1841 }
 0xbf9   :  { %898 = vrot.lane.b32.xlu0 %v1842_v56, %s2017_s23 }
 0xc30   :  { %v826_v57 = vpop.permute.xlu2 %825 }
 0xc31   :  { %v828_v41 = vmul.f32 %v826_v57, %v808_v62 }
 0xc33   :  { %v829_v58 = vpack.c.bf16 %v828_v41, %v828_v41 }
 0xc35   :  { %909 = vrot.lane.b32.xlu1 %v829_v58, %s2020_s30 }
 0xc6b   :  { %v899_v59 = vpop.permute.xlu0 %898 }
 0xc6c   :  { %v901_v60 = vmul.f32 %v899_v59, %v881_v37 }
 0xc6e   :  { %v2326_v61 = vpack.c.bf16 %v901_v60, %v901_v60 }
 0xc70   :  { %v979_v63 = vunpack.c.l.b16 %v2326_v61 }
 0xc72   :  { %v980_v46 = vpack.c.b16 %v979_v63, %v979_v63 }
 0xc74   :  { %981 = vrot.lane.b32.xlu2 %v980_v46, %s2020_s30 }
 0xca7   :  { %v910_v5 = vpop.permute.xlu1 %909 }
 0xca8   :  { %1692 = vmatmul.msk.bf16.vlgmr.msrb.gmra.mxu3 %vm218_vm0, %v910_v5  ;;  %1695 = vmatmul.msk.bf16.vlgmr.msra.gmra.mxu0 %vm218_vm0, %v910_v5 }
 0xca9   :  { %1274 = vmatpush.bf16.msrb.mxu3 %v2193_v18  ;;  %1338 = vmatpush.bf16.msra.mxu0 %v2175_v12 }
 0xcad   :  { %1275 = vmatpush.bf16.msrb.mxu3 %v2196_v19  ;;  %1339 = vmatpush.bf16.msra.mxu0 %v2181_v13 }
 0xcce   :  { %v982_v40 = vpop.permute.xlu2 %981 }
 0xccf   :  { %1696 = vmatmul.msk.bf16.vlgmr.msrb.gmra.mxu1 %vm218_vm0, %v982_v40 }
 0xcd0   :  { %1358 = vmatpush.bf16.msrb.mxu1 %v2193_v18 }
 0xcd4   :  { %1359 = vmatpush.bf16.msrb.mxu1 %v2196_v19 }
 0xd25   :  { %v975_v51 = vpop.f32.mrf.mxu0 }
 0xd2b   :  { %v923_v11 = vpop.f32.mrf.mxu3 }
 0xd2c   :  { %v924_v0 = vadd.f32 %v923_v11, %v2162_v1 }
 0xd2d   :  { %v977_v2 = vpop.f32.mrf.mxu0 }
 0xd2e   :  { %v1693_v4 = vmul.f32 -1.442695, %v924_v0 }
 0xd30   :  { %1843 = vpow2.f32 %v1693_v4 }
 0xd33   :  { %v925_v6 = vpop.f32.mrf.mxu3 }
 0xd36   :  { %v1844_v12 = vpop.eup %1843 }
 0xd37   :  { %v930_v7 = vadd.f32 1.0, %v1844_v12 }
 0xd39   :  { %1845 = vrcp.f32 %v930_v7  ;;  %v942_v62 = vand.u32 2147483648, %v930_v7  ;;  %v940_v18 = vand.u32 2147483647, %v930_v7  ;;  %vm936_vm8 = vweird.f32 %v930_v7 }
 0xd3b   :  { %v943_v19 = vor.u32 1.1754944e-38, %v942_v62  ;;  %vm941_vm10 = vcmp.eq.f32.partialorder %v940_v18, 8.507059e+37 }
 0xd3f   :  { %v1846_v8 = vpop.eup %1845 }
 0xd40   :  { %v932_v13 = vmul.f32 %v1846_v8, %v930_v7  ;;  %vm937_vm7 = vweird.f32 %v1846_v8 }
 0xd41   :  { %vm938_vm9 = vmor %vm936_vm8, %vm937_vm7 }
 0xd42   :  { %v933_v10 = vsub.f32 1.0, %v932_v13 }
 0xd44   :  { %v934_v16 = vmul.f32 %v1846_v8, %v933_v10 }
 0xd46   :  { %v935_v17 = vadd.f32 %v1846_v8, %v934_v16 }
 0xd48   :  { %v939_v20 = vsel %vm938_vm9, %v1846_v8, %v935_v17 }
 0xd49   :  { %v944_v1 = vsel %vm941_vm10, %v943_v19, %v939_v20 }
 0xd4a   :  { %v946_v22 = vmul.f32 2.0, %v944_v1  ;;  %v948_v54 = vmul.f32 %v944_v1, %v2316_v48 }
 0xd4c   :  { %v995_v23 = vpop.f32.mrf.mxu1  ;;  %v1694_v24 = vadd.f32 -1.0, %v946_v22 }
 0xd4d   :  { %v996_v9 = vadd.f32 %v995_v23, %v975_v51 }
 0xd4e   :  { %950 = vrot.lane.b32.xlu0 %v1694_v24, %s2017_s23 }
 0xd4f   :  { %v999_v25 = vadd.f32 %v2215_v15, %v996_v9 }
 0xd51   :  { %v1697_v26 = vmul.f32 -1.442695, %v999_v25 }
 0xd53   :  { %1847 = vpow2.f32 %v1697_v26 }
 0xd54   :  { %v997_v28 = vpop.f32.mrf.mxu1 }
 0xd59   :  { %v1848_v29 = vpop.eup %1847 }
 0xd5a   :  { %v1003_v30 = vadd.f32 1.0, %v1848_v29 }
 0xd5c   :  { %1849 = vrcp.f32 %v1003_v30  ;;  %v1015_v21 = vand.u32 2147483648, %v1003_v30  ;;  %v1013_v14 = vand.u32 2147483647, %v1003_v30  ;;  %vm1009_vm12 = vweird.f32 %v1003_v30 }
 0xd5e   :  { %v1016_v39 = vor.u32 1.1754944e-38, %v1015_v21  ;;  %vm1014_vm14 = vcmp.eq.f32.partialorder %v1013_v14, 8.507059e+37 }
 0xd62   :  { %v1850_v33 = vpop.eup %1849 }
 0xd63   :  { %v1005_v34 = vmul.f32 %v1850_v33, %v1003_v30  ;;  %vm1010_vm11 = vweird.f32 %v1850_v33 }
 0xd64   :  { %vm1011_vm13 = vmor %vm1009_vm12, %vm1010_vm11 }
 0xd65   :  { %v1006_v35 = vsub.f32 1.0, %v1005_v34 }
 0xd67   :  { %v1007_v36 = vmul.f32 %v1850_v33, %v1006_v35 }
 0xd69   :  { %v1008_v37 = vadd.f32 %v1850_v33, %v1007_v36 }
 0xd6b   :  { %v1012_v42 = vsel %vm1011_vm13, %v1850_v33, %v1008_v37 }
 0xd6c   :  { %v1017_v43 = vsel %vm1014_vm14, %v1016_v39, %v1012_v42 }
 0xd6d   :  { %v1019_v45 = vmul.f32 2.0, %v1017_v43  ;;  %v1021_v41 = vmul.f32 %v1017_v43, %v2321_v55 }
 0xd6f   :  { %v1698_v47 = vadd.f32 -1.0, %v1019_v45 }
 0xd71   :  { %1023 = vrot.lane.b32.xlu1 %v1698_v47, %s2017_s23 }
 0xdc0   :  { %v951_v49 = vpop.permute.xlu0 %950 }
 0xdc1   :  { %v953_v32 = vmul.f32 %v951_v49, %v944_v1 }
 0xdc3   :  { %955 = vrot.lane.b32.xlu2 %v953_v32, %s2020_s30 }
 0xde3   :  { %v1024_v50 = vpop.permute.xlu1 %1023 }
 0xde4   :  { %v1026_v52 = vmul.f32 %v1024_v50, %v1017_v43 }
 0xde6   :  { %1028 = vrot.lane.b32.xlu0 %v1026_v52, %s2020_s30 }
 0xe1d   :  { %v956_v31 = vpop.permute.xlu2 %955 }
 0xe1e   :  { %v2346_v56 = vadd.f32 %v956_v31, %v948_v54 }
 0xe20   :  { %1851 = vtanh.f32 %v2346_v56 }
 0xe26   :  { %v1852_v57 = vpop.eup %1851 }
 0xe27   :  { %961 = vrot.lane.b32.xlu1 %v1852_v57, %s2017_s23 }
 0xe58   :  { %v1029_v58 = vpop.permute.xlu0 %1028 }
 0xe59   :  { %v2351_v59 = vadd.f32 %v1029_v58, %v1021_v41 }
 0xe5b   :  { %1853 = vtanh.f32 %v2351_v59 }
 0xe61   :  { %v1854_v60 = vpop.eup %1853 }
 0xe62   :  { %1034 = vrot.lane.b32.xlu2 %v1854_v60, %s2017_s23 }
 0xe99   :  { %v962_v63 = vpop.permute.xlu1 %961 }
 0xe9a   :  { %v964_v48 = vmul.f32 %v962_v63, %v944_v1 }
 0xe9c   :  { %v965_v46 = vpack.c.bf16 %v964_v48, %v964_v48 }
 0xe9e   :  { %1045 = vrot.lane.b32.xlu0 %v965_v46, %s2020_s30 }
 0xebc   :  { %v1035_v5 = vpop.permute.xlu2 %1034 }
 0xebd   :  { %v1037_v40 = vmul.f32 %v1035_v5, %v1017_v43 }
 0xebf   :  { %v2356_v51 = vpack.c.bf16 %v1037_v40, %v1037_v40 }
 0xec1   :  { %v1115_v11 = vunpack.c.l.b16 %v2356_v51 }
 0xec3   :  { %v1116_v55 = vpack.c.b16 %v1115_v11, %v1115_v11 }
 0xec5   :  { %1117 = vrot.lane.b32.xlu1 %v1116_v55, %s2020_s30 }
 0xf10   :  { %v1046_v0 = vpop.permute.xlu0 %1045 }
 0xf11   :  { %1699 = vmatmul.msk.bf16.vlgmr.msrb.gmra.mxu2 %vm218_vm0, %v1046_v0  ;;  %1702 = vmatmul.msk.bf16.vlgmr.msra.gmra.mxu3 %vm218_vm0, %v1046_v0 }
 0xf37   :  { %v1118_v2 = vpop.permute.xlu1 %1117 }
 0xf38   :  { %1703 = vmatmul.msk.bf16.vlgmr.msrb.gmra.mxu0 %vm218_vm0, %v1118_v2 }
 0xf94   :  { %v1059_v4 = vpop.f32.mrf.mxu2  ;;  %v1111_v6 = vpop.f32.mrf.mxu3 }
 0xf95   :  { %v1060_v12 = vadd.f32 %v1059_v4, %v2165_v3 }
 0xf97   :  { %v1700_v7 = vmul.f32 -1.442695, %v1060_v12 }
 0xf99   :  { %1855 = vpow2.f32 %v1700_v7  ;;  %v1885_v7 = vld [vmem:[%s2486_s5] ss:$0 sm:$0xff] }
 0xf9c   :  { %v1061_v8 = vpop.f32.mrf.mxu2  ;;  %v1113_v13 = vpop.f32.mrf.mxu3 }
 0xf9d   :  { %v258_v8 = vadd.f32 %v1885_v7, %v2276_v44 }
 0xf9f   :  { %v1856_v10 = vpop.eup %1855 }
 0xfa0   :  { %v1066_v62 = vadd.f32 1.0, %v1856_v10 }
 0xfa2   :  { %1857 = vrcp.f32 %v1066_v62  ;;  %v1078_v19 = vand.u32 2147483648, %v1066_v62  ;;  %v1076_v1 = vand.u32 2147483647, %v1066_v62  ;;  %vm1072_vm1 = vweird.f32 %v1066_v62 }
 0xfa4   :  { %v1079_v23 = vor.u32 1.1754944e-38, %v1078_v19  ;;  %vm1077_vm3 = vcmp.eq.f32.partialorder %v1076_v1, 8.507059e+37 }
 0xfa8   :  { %v1858_v16 = vpop.eup %1857 }
 0xfa9   :  { %v1068_v18 = vmul.f32 %v1858_v16, %v1066_v62  ;;  %vm1073_vm15 = vweird.f32 %v1858_v16 }
 0xfaa   :  { %vm1074_vm2 = vmor %vm1072_vm1, %vm1073_vm15 }
 0xfab   :  { %v1069_v17 = vsub.f32 1.0, %v1068_v18 }
 0xfad   :  { %v1070_v20 = vmul.f32 %v1858_v16, %v1069_v17 }
 0xfaf   :  { %v1071_v22 = vadd.f32 %v1858_v16, %v1070_v20 }
 0xfb1   :  { %v1075_v24 = vsel %vm1074_vm2, %v1858_v16, %v1071_v22 }
 0xfb2   :  { %v1080_v3 = vsel %vm1077_vm3, %v1079_v23, %v1075_v24 }
 0xfb3   :  { %v1082_v9 = vmul.f32 2.0, %v1080_v3  ;;  %v1084_v57 = vmul.f32 %v1080_v3, %v2346_v56 }
 0xfb5   :  { %v1131_v25 = vpop.f32.mrf.mxu0  ;;  %v1701_v26 = vadd.f32 -1.0, %v1082_v9 }
 0xfb6   :  { %v1132_v28 = vadd.f32 %v1131_v25, %v1111_v6 }
 0xfb7   :  { %1086 = vrot.lane.b32.xlu0 %v1701_v26, %s2017_s23 }
 0xfb8   :  { %v1135_v29 = vadd.f32 %v2215_v15, %v1132_v28 }
 0xfba   :  { %v1704_v30 = vmul.f32 -1.442695, %v1135_v29 }
 0xfbc   :  { %1859 = vpow2.f32 %v1704_v30 }
 0xfbd   :  { %v1133_v33 = vpop.f32.mrf.mxu0 }
 0xfc2   :  { %v1860_v34 = vpop.eup %1859 }
 0xfc3   :  { %v1139_v35 = vadd.f32 1.0, %v1860_v34 }
 0xfc5   :  { %1861 = vrcp.f32 %v1139_v35  ;;  %v1151_v37 = vand.u32 2147483648, %v1139_v35  ;;  %v1149_v42 = vand.u32 2147483647, %v1139_v35  ;;  %vm1145_vm5 = vweird.f32 %v1139_v35 }
 0xfc7   :  { %v1152_v45 = vor.u32 1.1754944e-38, %v1151_v37  ;;  %vm1150_vm7 = vcmp.eq.f32.partialorder %v1149_v42, 8.507059e+37 }
 0xfcb   :  { %v1862_v21 = vpop.eup %1861 }
 0xfcc   :  { %v1141_v36 = vmul.f32 %v1862_v21, %v1139_v35  ;;  %vm1146_vm4 = vweird.f32 %v1862_v21  ;;  %v1886_v35 = vld [vmem:[%s2486_s5 + $0x1] ss:$0 sm:$0xff] }
 0xfcd   :  { %vm1147_vm6 = vmor %vm1145_vm5, %vm1146_vm4  ;;  %vm498_vm5 = vcmask 257024  }
 0xfce   :  { %v1142_v14 = vsub.f32 1.0, %v1141_v36 }
 0xfd0   :  { %v1143_v39 = vmul.f32 %v1862_v21, %v1142_v14 }
 0xfd2   :  { %v1144_v43 = vadd.f32 %v1862_v21, %v1143_v39 }
 0xfd4   :  { %v1148_v47 = vsel %vm1147_vm6, %v1862_v21, %v1144_v43 }
 0xfd5   :  { %v1153_v15 = vsel %vm1150_vm7, %v1152_v45, %v1148_v47 }
 0xfd6   :  { %v1155_v49 = vmul.f32 2.0, %v1153_v15  ;;  %v1157_v63 = vmul.f32 %v1153_v15, %v2351_v59 }
 0xfd8   :  { %v1705_v32 = vadd.f32 -1.0, %v1155_v49 }
 0xfda   :  { %1159 = vrot.lane.b32.xlu2 %v1705_v32, %s2017_s23 }
0x1029   :  { %v1087_v50 = vpop.permute.xlu0 %1086 }
0x102a   :  { %v1089_v52 = vmul.f32 %v1087_v50, %v1080_v3 }
0x102c   :  { %1091 = vrot.lane.b32.xlu2 %v1089_v52, %s2020_s30 }
0x1034   :  { %v1160_v54 = vpop.permute.xlu2 %1159 }
0x1035   :  { %v1162_v31 = vmul.f32 %v1160_v54, %v1153_v15 }
0x1037   :  { %1164 = vrot.lane.b32.xlu1 %v1162_v31, %s2020_s30 }
0x1086   :  { %v1092_v41 = vpop.permute.xlu2 %1091 }
0x1087   :  { %v2370_v58 = vadd.f32 %v1092_v41, %v1084_v57 }
0x1089   :  { %1863 = vtanh.f32 %v2370_v58 }
0x108f   :  { %v1864_v60 = vpop.eup %1863 }
0x1090   :  { %1097 = vrot.lane.b32.xlu1 %v1864_v60, %s2017_s23 }
0x10a9   :  { %v1165_v48 = vpop.permute.xlu1 %1164 }
0x10aa   :  { %v2375_v46 = vadd.f32 %v1165_v48, %v1157_v63 }
0x10ac   :  { %1865 = vtanh.f32 %v2375_v46 }
0x10b2   :  { %v1866_v5 = vpop.eup %1865 }
0x10b3   :  { %1170 = vrot.lane.b32.xlu0 %v1866_v5, %s2017_s23 }
0x1102   :  { %v1098_v40 = vpop.permute.xlu1 %1097 }
0x1103   :  { %v1100_v56 = vmul.f32 %v1098_v40, %v1080_v3 }
0x1105   :  { %v1101_v11 = vpack.c.bf16 %v1100_v56, %v1100_v56 }
0x1107   :  { %1181 = vrot.lane.b32.xlu2 %v1101_v11, %s2020_s30 }
0x1125   :  { %v1171_v55 = vpop.permute.xlu0 %1170 }
0x1126   :  { %v1173_v0 = vmul.f32 %v1171_v55, %v1153_v15 }
0x1128   :  { %v2380_v2 = vpack.c.bf16 %v1173_v0, %v1173_v0 }
0x112a   :  { %v1261_v4 = vunpack.c.l.b16 %v2380_v2 }
0x112c   :  { %v1262_v59 = vpack.c.b16 %v1261_v4, %v1261_v4 }
0x112e   :  { %1263 = vrot.lane.b32.xlu0 %v1262_v59, %s2020_s30 }
0x1161   :  { %v1182_v6 = vpop.permute.xlu2 %1181 }
0x1162   :  { %1706 = vmatmul.msk.bf16.vlgmr.msra.gmra.mxu1 %vm218_vm0, %v1182_v6  ;;  %1709 = vmatmul.msk.bf16.vlgmr.msra.gmra.mxu2 %vm218_vm0, %v1182_v6 }
0x11a0   :  { %v1264_v12 = vpop.permute.xlu0 %1263 }
0x11a1   :  { %1710 = vmatmul.msk.bf16.vlgmr.msrb.gmra.mxu3 %vm218_vm0, %v1264_v12 }
0x11df   :  { %v1195_v13 = vpop.f32.mrf.mxu1 }
0x11e0   :  { %v1196_v10 = vadd.f32 %v1195_v13, %v258_v8 }
0x11e2   :  { %v1707_v62 = vmul.f32 -1.442695, %v1196_v10 }
0x11e4   :  { %1867 = vpow2.f32 %v1707_v62 }
0x11e5   :  { %v1257_v16 = vpop.f32.mrf.mxu2 }
0x11e7   :  { %v1197_v18 = vpop.f32.mrf.mxu1 }
0x11ea   :  { %v1868_v17 = vpop.eup %1867 }
0x11eb   :  { %v1202_v19 = vadd.f32 1.0, %v1868_v17 }
0x11ed   :  { %1869 = vrcp.f32 %v1202_v19  ;;  %v1259_v20 = vpop.f32.mrf.mxu2  ;;  %v1214_v24 = vand.u32 2147483648, %v1202_v19  ;;  %v1212_v9 = vand.u32 2147483647, %v1202_v19  ;;  %vm1208_vm9 = vweird.f32 %v1202_v19 }
0x11ef   :  { %v1215_v44 = vor.u32 1.1754944e-38, %v1214_v24  ;;  %vm1213_vm11 = vcmp.eq.f32.partialorder %v1212_v9, 8.507059e+37 }
0x11f3   :  { %v1870_v1 = vpop.eup %1869 }
0x11f4   :  { %v1204_v22 = vmul.f32 %v1870_v1, %v1202_v19  ;;  %vm1209_vm8 = vweird.f32 %v1870_v1 }
0x11f5   :  { %vm1210_vm10 = vmor %vm1208_vm9, %vm1209_vm8 }
0x11f6   :  { %v1205_v23 = vsub.f32 1.0, %v1204_v22 }
0x11f8   :  { %v1206_v3 = vmul.f32 %v1870_v1, %v1205_v23 }
0x11fa   :  { %v1207_v25 = vadd.f32 %v1870_v1, %v1206_v3 }
0x11fc   :  { %v1211_v26 = vsel %vm1210_vm10, %v1870_v1, %v1207_v25 }
0x11fd   :  { %v1216_v28 = vsel %vm1213_vm11, %v1215_v44, %v1211_v26 }
0x11fe   :  { %v1218_v29 = vmul.f32 2.0, %v1216_v28  ;;  %v1220_v5 = vmul.f32 %v1216_v28, %v2370_v58 }
0x1200   :  { %v1708_v30 = vadd.f32 -1.0, %v1218_v29 }
0x1202   :  { %1222 = vrot.lane.b32.xlu2 %v1708_v30, %s2017_s23 }
0x1224   :  { %v1277_v33 = vpop.f32.mrf.mxu3 }
0x1225   :  { %v1278_v34 = vadd.f32 %v1277_v33, %v1257_v16 }
0x1227   :  { %v1281_v21 = vadd.f32 %v1886_v35, %v1278_v34 }
0x1229   :  { %v1711_v36 = vmul.f32 -1.442695, %v1281_v21 }
0x122b   :  { %1871 = vpow2.f32 %v1711_v36 }
0x122c   :  { %v1279_v14 = vpop.f32.mrf.mxu3 }
0x1231   :  { %v1872_v37 = vpop.eup %1871 }
0x1232   :  { %v1285_v39 = vadd.f32 1.0, %v1872_v37 }
0x1234   :  { %1873 = vrcp.f32 %v1285_v39  ;;  %v1297_v47 = vand.u32 2147483648, %v1285_v39  ;;  %v1295_v49 = vand.u32 2147483647, %v1285_v39  ;;  %vm1291_vm13 = vweird.f32 %v1285_v39 }
0x1236   :  { %v1298_v50 = vor.u32 1.1754944e-38, %v1297_v47  ;;  %vm1296_vm15 = vcmp.eq.f32.partialorder %v1295_v49, 8.507059e+37 }
0x123a   :  { %v1874_v42 = vpop.eup %1873 }
0x123b   :  { %v1287_v43 = vmul.f32 %v1874_v42, %v1285_v39  ;;  %vm1292_vm12 = vweird.f32 %v1874_v42 }
0x123c   :  { %vm1293_vm14 = vmor %vm1291_vm13, %vm1292_vm12 }
0x123d   :  { %v1288_v45 = vsub.f32 1.0, %v1287_v43  ;;  %v1769_v43 = vld [vmem:[%s2487_s6] sm:$0xff] }
0x123f   :  { %v1289_v15 = vmul.f32 %v1874_v42, %v1288_v45 }
0x1241   :  { %v1290_v32 = vadd.f32 %v1874_v42, %v1289_v15 }
0x1243   :  { %v1294_v52 = vsel %vm1293_vm14, %v1874_v42, %v1290_v32 }
0x1244   :  { %v1299_v54 = vsel %vm1296_vm15, %v1298_v50, %v1294_v52 }
0x1245   :  { %v1301_v31 = vmul.f32 2.0, %v1299_v54  ;;  %v1303_v55 = vmul.f32 %v1299_v54, %v2375_v46 }
0x1247   :  { %v1712_v57 = vadd.f32 -1.0, %v1301_v31 }
0x1249   :  { %1305 = vrot.lane.b32.xlu1 %v1712_v57, %s2017_s23 }
0x125c   :  { %v1223_v41 = vpop.permute.xlu2 %1222 }
0x125d   :  { %v1225_v60 = vmul.f32 %v1223_v41, %v1216_v28 }
0x125f   :  { %1227 = vrot.lane.b32.xlu1 %v1225_v60, %s2020_s30 }
0x12bb   :  { %v1306_v63 = vpop.permute.xlu1 %1305 }
0x12bc   :  { %v1308_v48 = vmul.f32 %v1306_v63, %v1299_v54  ;;  %v1788_v63 = vld [vmem:[%s2488_s7] ss:$0 sm:$0xff]  ;;  %s1536_s7 = sshll.u32 %s2022_s24, 4  ;;  %s1537_s7 = int_to_ptr.vmem [resolvable:$true] %s1536_s7 }
0x12be   :  { %1310 = vrot.lane.b32.xlu0 %v1308_v48, %s2020_s30 }
0x12d1   :  { %v1228_v40 = vpop.permute.xlu1 %1227 }
0x12d2   :  { %v2399_v56 = vadd.f32 %v1228_v40, %v1220_v5 }
0x12d4   :  { %1875 = vtanh.f32 %v2399_v56 }
0x12da   :  { %v1876_v11 = vpop.eup %1875 }
0x12db   :  { %1233 = vrot.lane.b32.xlu0 %v1876_v11, %s2017_s23 }
0x1330   :  { %v1311_v0 = vpop.permute.xlu0 %1310 }
0x1331   :  { %v2404_v4 = vadd.f32 %v1311_v0, %v1303_v55 }
0x1333   :  { %1877 = vtanh.f32 %v2404_v4 }
0x1339   :  { %v1878_v59 = vpop.eup %1877 }
0x133a   :  { %1316 = vrot.lane.b32.xlu2 %v1878_v59, %s2017_s23 }
0x134d   :  { %v1234_v6 = vpop.permute.xlu0 %1233 }
0x134e   :  { %v2408_v58 = vmul.f32 %v1234_v6, %v1216_v28 }
0x1350   :  { %v1237_v12 = vpack.c.bf16 %v2408_v58, %v2408_v58 }
0x1352   :  { %1327 = vrot.lane.b32.xlu1 %v1237_v12, %s2020_s30 }
0x1394   :  { %v1317_v7 = vpop.permute.xlu2 %1316 }
0x1395   :  { %v1319_v8 = vmul.f32 %v1317_v7, %v1299_v54 }
0x1397   :  { %v1320_v13 = vpack.c.bf16 %v1319_v8, %v1319_v8 }
0x1399   :  { %v1345_v46 = vunpack.c.l.b16 %v1320_v13 }
0x139b   :  { %v1346_v10 = vpack.c.b16 %v1345_v46, %v1345_v46 }
0x139d   :  { %1347 = vrot.lane.b32.xlu2 %v1346_v10, %s2020_s30 }
0x13c4   :  { %v1328_v62 = vpop.permute.xlu1 %1327 }
0x13c5   :  { %1713 = vmatmul.msk.bf16.vlgmr.msra.gmra.mxu0 %vm218_vm0, %v1328_v62 }
0x13f7   :  { %v1348_v16 = vpop.permute.xlu2 %1347 }
0x13f8   :  { %1714 = vmatmul.msk.bf16.vlgmr.msrb.gmra.mxu1 %vm218_vm0, %v1348_v16 }
0x1442   :  { %v1341_v18 = vpop.f32.mrf.mxu0 }
0x144a   :  { %v1343_v17 = vpop.f32.mrf.mxu0 }
0x1475   :  { %v1361_v19 = vpop.f32.mrf.mxu1 }
0x1476   :  { %v1362_v20 = vadd.f32 %v1361_v19, %v1341_v18 }
0x1478   :  { %v1365_v1 = vadd.f32 %v1886_v35, %v1362_v20 }
0x147a   :  { %v1715_v22 = vmul.f32 -1.442695, %v1365_v1 }
0x147c   :  { %1879 = vpow2.f32 %v1715_v22 }
0x147d   :  { %v1363_v23 = vpop.f32.mrf.mxu1 }
0x1482   :  { %v1880_v24 = vpop.eup %1879 }
0x1483   :  { %v1369_v3 = vadd.f32 1.0, %v1880_v24 }
0x1485   :  { %1881 = vrcp.f32 %v1369_v3  ;;  %v1381_v26 = vand.u32 2147483648, %v1369_v3  ;;  %v1379_v29 = vand.u32 2147483647, %v1369_v3  ;;  %vm1375_vm2 = vweird.f32 %v1369_v3 }
0x1487   :  { %v1382_v33 = vor.u32 1.1754944e-38, %v1381_v26  ;;  %vm1380_vm4 = vcmp.eq.f32.partialorder %v1379_v29, 8.507059e+37 }
0x148b   :  { %v1882_v9 = vpop.eup %1881 }
0x148c   :  { %v1371_v25 = vmul.f32 %v1882_v9, %v1369_v3  ;;  %vm1376_vm1 = vweird.f32 %v1882_v9 }
0x148d   :  { %vm1377_vm3 = vmor %vm1375_vm2, %vm1376_vm1 }
0x148e   :  { %v1372_v44 = vsub.f32 1.0, %v1371_v25 }
0x1490   :  { %v1373_v28 = vmul.f32 %v1882_v9, %v1372_v44 }
0x1492   :  { %v1374_v30 = vadd.f32 %v1882_v9, %v1373_v28 }
0x1494   :  { %v1378_v34 = vsel %vm1377_vm3, %v1882_v9, %v1374_v30 }
0x1495   :  { %v1383_v35 = vsel %vm1380_vm4, %v1382_v33, %v1378_v34 }
0x1496   :  { %v1385_v21 = vmul.f32 2.0, %v1383_v35 }
0x1498   :  { %v1716_v36 = vadd.f32 -1.0, %v1385_v21 }
0x149a   :  { %1389 = vrot.lane.b32.xlu0 %v1716_v36, %s2017_s23 }
0x14a2   :  { %495 = vrot.lane.b32.xlu0 %v2232_v27, %s2020_s30 }
0x14aa   :  { %1176 = vrot.lane.b32.xlu0 %v2380_v2, %s2020_s30  ;;  %v1770_v2 = vld [vmem:[%s2487_s6 + $0x8] sm:$0xff]  ;;  %s2021_s6 = smov 96  }
0x14ab   :  { %1488 = vmatpush.bf16.msrb.mxu2 %v1770_v2  ;;  %1771 = vmatpush.bf16.msra.mxu3 %v1770_v2 }
0x14af   :  { %1489 = vmatpush.bf16.msrb.mxu2 %v1769_v43  ;;  %1772 = vmatpush.bf16.msra.mxu3 %v1769_v43 }
0x14b2   :  { %1322 = vrot.lane.b32.xlu0 %v1320_v13, %s2020_s30 }
0x150c   :  { %v1390_v14 = vpop.permute.xlu0 %1389 }
0x150d   :  { %v1392_v37 = vmul.f32 %v1390_v14, %v1383_v35 }
0x150f   :  { %1394 = vrot.lane.b32.xlu1 %v1392_v37, %s2020_s30 }
0x1514   :  { %v496_v39 = vpop.permute.xlu0 %495 }
0x1515   :  { %499 = vst.msk [vmem:[#allocation2] sm:$0xf] %vm498_vm5, %v496_v39 }
0x1517   :  { %632 = vrot.lane.b32.xlu1 %v2263_v38, %s2020_s30  ;;  %v1387_v38 = vmul.f32 %v1383_v35, %v2404_v4 }
0x151c   :  { %v1177_v42 = vpop.permute.xlu0 %1176 }
0x151d   :  { %1179 = vst.msk [vmem:[#allocation2 + $0x14] sm:$0xf] %vm498_vm5, %v1177_v42 }
0x151f   :  { %768 = vrot.lane.b32.xlu1 %v2296_v53, %s2020_s30 }
0x1524   :  { %v1323_v27 = vpop.permute.xlu0 %1322 }
0x1525   :  { %1325 = vst.msk [vmem:[#allocation2 + $0x18] sm:$0xf] %vm498_vm5, %v1323_v27 }
0x1581   :  { %v1395_v45 = vpop.permute.xlu1 %1394 }
0x1582   :  { %v1397_v47 = vadd.f32 %v1395_v45, %v1387_v38 }
0x1584   :  { %1883 = vtanh.f32 %v1397_v47 }
0x1589   :  { %v633_v53 = vpop.permute.xlu1 %632 }
0x158a   :  { %v1884_v15 = vpop.eup %1883  ;;  %635 = vst.msk [vmem:[#allocation2 + $0x4] sm:$0xf] %vm498_vm5, %v633_v53 }
0x158b   :  { %1400 = vrot.lane.b32.xlu2 %v1884_v15, %s2017_s23 }
0x1591   :  { %v769_v49 = vpop.permute.xlu1 %768  ;;  %v1765_v32 = vld [vmem:[#allocation2] sm:$0xff] }
0x1592   :  { %771 = vst.msk [vmem:[#allocation2 + $0x8] sm:$0xf] %vm498_vm5, %v769_v49  ;;  %1741 = vmatmul.msk.bf16.vlgmr.msrb.gmra.mxu2 %vm218_vm0, %v1765_v32 }
0x1593   :  { %1040 = vrot.lane.b32.xlu2 %v2356_v51, %s2020_s30 }
0x159b   :  { %904 = vrot.lane.b32.xlu2 %v2326_v61, %s2020_s30 }
0x15a3   :  { %1239 = vrot.lane.b32.xlu2 %v2408_v58, %s2020_s30 }
0x15ab   :  { %1417 = vrot.lane.b32.xlu2 %v1397_v47, %s2021_s6 }
0x15e5   :  { %v1401_v50 = vpop.permute.xlu2 %1400 }
0x15e6   :  { %v1403_v52 = vmul.f32 %v1401_v50, %v1383_v35 }
0x15e8   :  { %v1404_v54 = vpack.c.bf16 %v1403_v52, %v1403_v52  ;;  %1411 = vrot.lane.b32.xlu0 %v1403_v52, %s2020_s30 }
0x15ea   :  { %1406 = vrot.lane.b32.xlu1 %v1404_v54, %s2020_s30 }
0x15ed   :  { %v1041_v31 = vpop.permute.xlu2 %1040 }
0x15ee   :  { %1043 = vst.msk [vmem:[#allocation2 + $0x10] sm:$0xf] %vm498_vm5, %v1041_v31 }
0x15f2   :  { %1244 = vrot.lane.b32.xlu1 %v2399_v56, %s2021_s6 }
0x15f5   :  { %v905_v51 = vpop.permute.xlu2 %904  ;;  %v1767_v57 = vld [vmem:[#allocation2 + $0x10] sm:$0xff] }
0x15f6   :  { %907 = vst.msk [vmem:[#allocation2 + $0xc] sm:$0xf] %vm498_vm5, %v905_v51  ;;  %1743 = vmatmul.msk.bf16.vlgmr.msra.gmra.mxu3 %vm218_vm0, %v1767_v57 }
0x15fd   :  { %v1240_v61 = vpop.permute.xlu2 %1239  ;;  %v1766_v41 = vld [vmem:[#allocation2 + $0x8] sm:$0xff] }
0x15fe   :  { %1242 = vst.msk [vmem:[#allocation9] sm:$0xff] %vm218_vm0, %v1240_v61  ;;  %1742 = vmatmul.msk.bf16.gmra.mxu2 %vm218_vm0, %v1766_v41 }
0x1605   :  { %v1418_v60 = vpop.permute.xlu2 %1417 }
0x1606   :  { %1421 = vst.msk [vmem:[#allocation11 + $0x8] sm:$0xff] %vm218_vm0, %v1418_v60 }
0x1615   :  { %v1491_v48 = vpop.f32.mrf.mxu2 }
0x1616   :  { %v1492_v5 = vadd.f32 %v1788_v63, %v1491_v48 }
0x1618   :  { %1511 = vst [vmem:[#allocation8] sm:$0xff] %v1492_v5 }
0x161d   :  { %v1493_v40 = vpop.f32.mrf.mxu2 }
0x161e   :  { %v1494_v56 = vadd.f32 %v1788_v63, %v1493_v40 }
0x1620   :  { %1512 = vst [vmem:[#allocation8 + $0x8] sm:$0xff] %v1494_v56 }
0x165a   :  { %v1412_v11 = vpop.permute.xlu0 %1411 }
0x165b   :  { %1415 = vst.msk [vmem:[#allocation9 + $0x8] sm:$0xff] %vm218_vm0, %v1412_v11 }
0x165c   :  { %v1407_v55 = vpop.permute.xlu1 %1406  ;;  %1544 = dma.vmem_to_hbm [thread:$0]  %s1537_s7, 256, %s1539_s4, [#allocation10], %s2023_s26, %s2023_s26, %s2024_s27  }
0x165d   :  { %1409 = vst.msk [vmem:[#allocation2 + $0x1c] sm:$0xf] %vm498_vm5, %v1407_v55 }
0x1664   :  { %v1245_v0 = vpop.permute.xlu1 %1244  ;;  %v1768_v4 = vld [vmem:[#allocation2 + $0x18] sm:$0xff] }
0x1665   :  { %1247 = vst.msk [vmem:[#allocation11] sm:$0xff] %vm218_vm0, %v1245_v0  ;;  %1744 = vmatmul.msk.bf16.gmra.mxu3 %vm218_vm0, %v1768_v4 }
0x1666   :  { %1557 = dma.vmem_to_hbm [thread:$0]  %s1550_s0, 256, %s1552_s11, [#allocation10], %s2023_s26, %s2023_s26, %s2024_s27  }
0x1679   :  { %v1501_v59 = vpop.f32.mrf.mxu3 }
0x167a   :  { %v1502_v6 = vadd.f32 %v1788_v63, %v1501_v59 }
0x167c   :  { %1515 = vst [vmem:[#allocation8 + $0x20] sm:$0xff] %v1502_v6 }
0x1681   :  { %v1496_v58 = vpop.f32.mrf.mxu2  ;;  %v1503_v12 = vpop.f32.mrf.mxu3 }
0x1682   :  { %v1497_v7 = vadd.f32 %v1788_v63, %v1496_v58  ;;  %v1504_v8 = vadd.f32 %v1788_v63, %v1503_v12 }
0x1684   :  { %1513 = vst [vmem:[#allocation8 + $0x10] sm:$0xff] %v1497_v7 }
0x1685   :  { %1516 = vst [vmem:[#allocation8 + $0x28] sm:$0xff] %v1504_v8 }
0x1689   :  { %v1498_v13 = vpop.f32.mrf.mxu2 }
0x168a   :  { %v1499_v46 = vadd.f32 %v1788_v63, %v1498_v13 }
0x168c   :  { %1514 = vst [vmem:[#allocation8 + $0x18] sm:$0xff] %v1499_v46 }
0x16e8   :  { %v1506_v10 = vpop.f32.mrf.mxu3 }
0x16e9   :  { %v1507_v62 = vadd.f32 %v1788_v63, %v1506_v10 }
0x16eb   :  { %1517 = vst [vmem:[#allocation8 + $0x30] sm:$0xff] %v1507_v62 }
0x16f0   :  { %v1508_v16 = vpop.f32.mrf.mxu3 }
0x16f1   :  { %v1509_v18 = vadd.f32 %v1788_v63, %v1508_v16 }
0x16f3   :  { %1518 = vst [vmem:[#allocation8 + $0x38] sm:$0xff] %v1509_v18 }
0x16f4   :  { %1531 = dma.vmem_to_hbm [thread:$0]  %s1524_s10, 1024, %s1526_s14, [#allocation5], %s2023_s26, %s2023_s26, %s2024_s27  }
0x16f5   :  { %2011 = dma.done.wait [#allocation5], 1024  }
0x16f6   :  { %2012 = vsyncadd [#allocation5], 4294966272 }
0x16f7   :  { %2013 = dma.done.wait [#allocation10], 512  }
0x16f8   :  { %2014 = vsyncadd [#allocation10], 4294966784 }
0x16f9   :  { %1570 = vsyncpa [#allocation4], 1 }
0x16fa   :  { %1571 = vsyncpa [#allocation7], 1 }
0x16fb   :  { %1572 = vsyncpa [#allocation5], 1 }
0x16fc   :  { %1573 = vsyncpa [#allocation10], 1 }

</bundles_post_ra>
